<compile_context>
chip_gen: v6e
topology: v6e:2x2x1
jax: 0.10.0
libtpu: 0.0.40
codegen_flags: <defaults>
</compile_context>

<pallas_src>
import jax
import jax.numpy as jnp
from jax import lax
from jax.experimental import pallas as pl
from jax.experimental.pallas import tpu as pltpu


def _make_sepconv_kernel(*, c_in, c_mid, c_out, kh_sz, kw_sz, h_in, w_in,
                         h_out, w_out, padding, tb):
    """Build the per-batch-block kernel. All sizes are static Python ints."""
    dm = c_mid // c_in  # depth_multiplier
    hp, wp = h_in + 2 * padding, w_in + 2 * padding

    def _body(load_plane, wd_ref, bd_ref, wp_ref, bp_ref, o_ref):
        # ---- depthwise conv: unrolled shifted-slice FMAs on the VPU --------
        # Accumulator starts from the first tap with the bias folded in.
        # TODO(synk): for large W, do the kw lane shift with pltpu.roll so it
        # lands in the XLU slot instead of value slicing on the VALU path.
        mids = []
        for c in range(c_in):
            x_c = load_plane(c)                          # (TB, Hp, Wp) f32
            for r in range(dm):
                m = c * dm + r
                acc = x_c[:, 0:h_out, 0:w_out] * wd_ref[m, 0] + bd_ref[0, m]
                for t in range(1, kh_sz * kw_sz):
                    i, j = divmod(t, kw_sz)
                    acc = acc + x_c[:, i:i + h_out, j:j + w_out] * wd_ref[m, t]
                mids.append(acc)

        # ---- pointwise 1x1 conv: C_mid is tiny -> VPU FMAs, skip the MXU ---
        # TODO(synk): for C_mid >~ 64 (v5e) / 128 (v6e, v7x) reshape to
        # (H_out*W_out, C_mid) and use jnp.dot(..., preferred_element_type=
        # jnp.float32) on the MXU instead.
        outs = []
        for o in range(c_out):
            out = mids[0] * wp_ref[o, 0] + bp_ref[0, o]
            for m in range(1, c_mid):
                out = out + mids[m] * wp_ref[o, m]
            outs.append(out)

        # Single store of all C_out planes.
        # TODO(synk): a lane-dense (TB, C_out, H_out*W_out) output slab would
        # turn the narrow (W_out-lane) stores into full-width vst's; needs an
        # in-register (H_out, W_out) -> (H_out*W_out,) relayout.
        o_ref[...] = jnp.stack(outs, axis=1).astype(o_ref.dtype)

    if padding == 0:
        def kernel(x_ref, wd_ref, bd_ref, wp_ref, bp_ref, o_ref):
            _body(lambda c: x_ref[:, c].astype(jnp.float32),
                  wd_ref, bd_ref, wp_ref, bp_ref, o_ref)
    else:
        p = padding

        def kernel(x_ref, wd_ref, bd_ref, wp_ref, bp_ref, o_ref, xpad_ref):
            # Zero only the thin border strips (not the whole scratch), every
            # grid step: hoisting this under pl.when(program_id == 0) would be
            # wrong once the "parallel" batch axis is sharded across two cores.
            xpad_ref[:, :, 0:p, :] = jnp.zeros((tb, c_in, p, wp), jnp.float32)
            xpad_ref[:, :, p + h_in:, :] = jnp.zeros((tb, c_in, p, wp),
                                                     jnp.float32)
            xpad_ref[:, :, :, 0:p] = jnp.zeros((tb, c_in, hp, p), jnp.float32)
            xpad_ref[:, :, :, p + w_in:] = jnp.zeros((tb, c_in, hp, p),
                                                     jnp.float32)
            # Single batched interior write (one pass over all TB*C_in planes).
            xpad_ref[:, :, p:p + h_in, p:p + w_in] = (
                x_ref[...].astype(jnp.float32))
            _body(lambda c: xpad_ref[:, c],
                  wd_ref, bd_ref, wp_ref, bp_ref, o_ref)

    return kernel


def _pick_batch_block(n, target=8):
    """Batch elements per grid step: amortize the per-step overhead, but keep
    the grid length >= 2 when possible so v7x's two TensorCores both get work
    (on v5e/v6e the 'parallel' axis is a no-op; batching is what helps)."""
    tb = max(1, min(target, n))
    if n > 1:
        tb = min(tb, pl.cdiv(n, 2))
    return tb


def separable_conv2d(x_nchw, w_dw, b_dw, w_pw, b_pw, *, kernel_size=3,
                     stride=1, padding=0, dilation=1, batch_block=8):
    """Forward pass of SeparableConv2d (NCHW in/out, PyTorch weight layouts)."""
    # TODO(synk): stride != 1 / dilation != 1 not implemented (module defaults).
    assert stride == 1 and dilation == 1, "only the module defaults are covered"
    N, C_in, H, W = x_nchw.shape
    C_mid = w_dw.shape[0]
    C_out = w_pw.shape[0]
    assert C_mid % C_in == 0, "C_mid must be C_in * depth_multiplier"
    assert w_pw.shape[1] == C_mid, "pointConv weight mismatch"
    KH = KW = kernel_size

    Hp, Wp = H + 2 * padding, W + 2 * padding
    H_out, W_out = Hp - KH + 1, Wp - KW + 1

    TB = _pick_batch_block(N, batch_block)
    grid_n = pl.cdiv(N, TB)

    # Tiny weight tables -> SMEM-friendly f32 tables (pure reshapes; no
    # transpose of the activation tensor anywhere).
    wd_tbl = w_dw.reshape(C_mid, KH * KW).astype(jnp.float32)   # [m, i*KW + j]
    wp_tbl = w_pw.reshape(C_out, C_mid).astype(jnp.float32)     # [o, m]
    bd_tbl = b_dw.reshape(1, C_mid).astype(jnp.float32)
    bp_tbl = b_pw.reshape(1, C_out).astype(jnp.float32)

    kernel = _make_sepconv_kernel(
        c_in=C_in, c_mid=C_mid, c_out=C_out, kh_sz=KH, kw_sz=KW,
        h_in=H, w_in=W, h_out=H_out, w_out=W_out, padding=padding, tb=TB)

    scratch = ()
    if padding > 0:
        scratch = (pltpu.VMEM((TB, C_in, Hp, Wp), jnp.float32),)

    itemsize = x_nchw.dtype.itemsize
    cost = pl.CostEstimate(
        flops=2 * N * H_out * W_out * (C_mid * KH * KW + C_out * C_mid),
        transcendentals=0,
        bytes_accessed=(N * C_in * H * W + N * C_out * H_out * W_out) * itemsize
        + 4 * (wd_tbl.size + wp_tbl.size + bd_tbl.size + bp_tbl.size),
    )

    smem = pl.BlockSpec(memory_space=pltpu.MemorySpace.SMEM)
    # TODO(synk): for large images, tile H_out rows (with a KH-1 input halo in
    # the index_map) so 2x(in block + out block) + pad scratch stays under
    # ~24-28 MiB on v7x (64 MiB physical VMEM vs 128 MiB on v5e/v6e).
    return pl.pallas_call(
        kernel,
        out_shape=jax.ShapeDtypeStruct((N, C_out, H_out, W_out), x_nchw.dtype),
        grid=(grid_n,),
        in_specs=[
            pl.BlockSpec((TB, C_in, H, W), lambda n: (n, 0, 0, 0)),
            smem,   # depthwise weights
            smem,   # depthwise bias
            smem,   # pointwise weights
            smem,   # pointwise bias
        ],
        out_specs=pl.BlockSpec((TB, C_out, H_out, W_out),
                               lambda n: (n, 0, 0, 0)),
        scratch_shapes=scratch,
        compiler_params=pltpu.CompilerParams(
            dimension_semantics=("parallel",),
            vmem_limit_bytes=32 * 1024 * 1024),
        cost_estimate=cost,
    )(x_nchw, wd_tbl, bd_tbl, wp_tbl, bp_tbl)


def _reference(x, w_dw, b_dw, w_pw, b_pw, *, groups, padding):
    """Plain-JAX reference mirroring nn.Conv2d semantics (for validation)."""
    dn = ("NCHW", "OIHW", "NCHW")
    pad2 = [(padding, padding), (padding, padding)]
    y = lax.conv_general_dilated(x, w_dw, (1, 1), pad2,
                                 feature_group_count=groups,
                                 dimension_numbers=dn)
    y = y + b_dw[None, :, None, None]
    z = lax.conv_general_dilated(y, w_pw, (1, 1), "VALID",
                                 dimension_numbers=dn)
    return z + b_pw[None, :, None, None]


if __name__ == "__main__":
    def _run_case(key, *, N, C_in, H, W, C_out, K, padding, depth_multiplier):
        C_mid = C_in * depth_multiplier
        kx, k1, k2, k3, k4 = jax.random.split(key, 5)
        x = jax.random.normal(kx, (N, C_in, H, W), dtype=jnp.float32)
        # PyTorch layouts: spatialConv.weight (C_mid, 1, K, K),
        # pointConv.weight (C_out, C_mid, 1, 1).
        w_dw = jax.random.normal(k1, (C_mid, 1, K, K), dtype=jnp.float32) * 0.2
        b_dw = jax.random.normal(k2, (C_mid,), dtype=jnp.float32) * 0.1
        w_pw = jax.random.normal(k3, (C_out, C_mid, 1, 1), dtype=jnp.float32) * 0.2
        b_pw = jax.random.normal(k4, (C_out,), dtype=jnp.float32) * 0.1

        out = separable_conv2d(x, w_dw, b_dw, w_pw, b_pw,
                               kernel_size=K, padding=padding)
        out = jax.block_until_ready(out)

        ref = _reference(x, w_dw, b_dw, w_pw, b_pw, groups=C_in,
                         padding=padding)
        assert out.shape == ref.shape, (out.shape, ref.shape)
        err = float(jnp.max(jnp.abs(out - ref)))
        assert jnp.allclose(out, ref, atol=1e-4, rtol=1e-4), err

    key = jax.random.PRNGKey(0)
    k1, k2, k3 = jax.random.split(key, 3)
    # Module demo config: in=4, out=8, kernel=3, stride=1, padding=0, dm=1.
    _run_case(k1, N=2, C_in=4, H=16, W=16, C_out=8, K=3, padding=0,
              depth_multiplier=1)
    # Exercise in-kernel padding and depth_multiplier > 1.
    _run_case(k2, N=2, C_in=3, H=12, W=12, C_out=8, K=3, padding=1,
              depth_multiplier=2)
    # Exercise a batch block > 1 (TB=4, grid=2) together with padding.
    _run_case(k3, N=8, C_in=4, H=16, W=16, C_out=8, K=3, padding=1,
              depth_multiplier=1)
    print("KERNEL_OK")
</pallas_src>

<mosaic_0001>
module attributes {stable_mosaic.version = 11 : i64} {
  func.func @kernel(%arg0: i32, %arg1: memref<1x4x16x16xf32, #tpu.memory_space<vmem>>, %arg2: memref<4x9xf32, #tpu.memory_space<smem>>, %arg3: memref<1x4xf32, #tpu.memory_space<smem>>, %arg4: memref<8x4xf32, #tpu.memory_space<smem>>, %arg5: memref<1x8xf32, #tpu.memory_space<smem>>, %arg6: memref<1x8x14x14xf32, #tpu.memory_space<vmem>>) attributes {dimension_semantics = [#tpu.dimension_semantics<parallel>], iteration_bounds = array<i64: 2>, scalar_prefetch = 0 : i64, scratch_operands = 0 : i64, tpu.core_type = #tpu.core_type<tc>, window_params = [{transform_indices = @transform_0, window_bounds = array<i64: 1, 4, 16, 16>}, {transform_indices = @transform_1, window_bounds = array<i64: 4, 9>}, {transform_indices = @transform_2, window_bounds = array<i64: 1, 4>}, {transform_indices = @transform_3, window_bounds = array<i64: 8, 4>}, {transform_indices = @transform_4, window_bounds = array<i64: 1, 8>}, {transform_indices = @transform_5, window_bounds = array<i64: 1, 8, 14, 14>}]} {
    %c0 = arith.constant 0 : index
    %c0_0 = arith.constant 0 : index
    %c0_1 = arith.constant 0 : index
    %c0_2 = arith.constant 0 : index
    %0 = vector.load %arg1[%c0, %c0_0, %c0_1, %c0_2] : memref<1x4x16x16xf32, #tpu.memory_space<vmem>>, vector<1x1x16x16xf32>
    %1 = vector.shape_cast %0 : vector<1x1x16x16xf32> to vector<1x16x16xf32>
    %2 = vector.extract_strided_slice %1 {offsets = [0, 0, 0], sizes = [1, 14, 14], strides = [1, 1, 1]} : vector<1x16x16xf32> to vector<1x14x14xf32>
    %c0_3 = arith.constant 0 : index
    %c0_4 = arith.constant 0 : index
    %3 = memref.load %arg2[%c0_3, %c0_4] : memref<4x9xf32, #tpu.memory_space<smem>>
    %4 = vector.broadcast %3 : f32 to vector<1x14x14xf32>
    %5 = arith.mulf %2, %4 : vector<1x14x14xf32>
    %c0_5 = arith.constant 0 : index
    %c0_6 = arith.constant 0 : index
    %6 = memref.load %arg3[%c0_5, %c0_6] : memref<1x4xf32, #tpu.memory_space<smem>>
    %7 = vector.broadcast %6 : f32 to vector<1x14x14xf32>
    %8 = arith.addf %5, %7 : vector<1x14x14xf32>
    %9 = vector.extract_strided_slice %1 {offsets = [0, 0, 1], sizes = [1, 14, 14], strides = [1, 1, 1]} : vector<1x16x16xf32> to vector<1x14x14xf32>
    %c0_7 = arith.constant 0 : index
    %c1 = arith.constant 1 : index
    %10 = memref.load %arg2[%c0_7, %c1] : memref<4x9xf32, #tpu.memory_space<smem>>
    %11 = vector.broadcast %10 : f32 to vector<1x14x14xf32>
    %12 = arith.mulf %9, %11 : vector<1x14x14xf32>
    %13 = arith.addf %8, %12 : vector<1x14x14xf32>
    %14 = vector.extract_strided_slice %1 {offsets = [0, 0, 2], sizes = [1, 14, 14], strides = [1, 1, 1]} : vector<1x16x16xf32> to vector<1x14x14xf32>
    %c0_8 = arith.constant 0 : index
    %c2 = arith.constant 2 : index
    %15 = memref.load %arg2[%c0_8, %c2] : memref<4x9xf32, #tpu.memory_space<smem>>
    %16 = vector.broadcast %15 : f32 to vector<1x14x14xf32>
    %17 = arith.mulf %14, %16 : vector<1x14x14xf32>
    %18 = arith.addf %13, %17 : vector<1x14x14xf32>
    %19 = vector.extract_strided_slice %1 {offsets = [0, 1, 0], sizes = [1, 14, 14], strides = [1, 1, 1]} : vector<1x16x16xf32> to vector<1x14x14xf32>
    %c0_9 = arith.constant 0 : index
    %c3 = arith.constant 3 : index
    %20 = memref.load %arg2[%c0_9, %c3] : memref<4x9xf32, #tpu.memory_space<smem>>
    %21 = vector.broadcast %20 : f32 to vector<1x14x14xf32>
    %22 = arith.mulf %19, %21 : vector<1x14x14xf32>
    %23 = arith.addf %18, %22 : vector<1x14x14xf32>
    %24 = vector.extract_strided_slice %1 {offsets = [0, 1, 1], sizes = [1, 14, 14], strides = [1, 1, 1]} : vector<1x16x16xf32> to vector<1x14x14xf32>
    %c0_10 = arith.constant 0 : index
    %c4 = arith.constant 4 : index
    %25 = memref.load %arg2[%c0_10, %c4] : memref<4x9xf32, #tpu.memory_space<smem>>
    %26 = vector.broadcast %25 : f32 to vector<1x14x14xf32>
    %27 = arith.mulf %24, %26 : vector<1x14x14xf32>
    %28 = arith.addf %23, %27 : vector<1x14x14xf32>
    %29 = vector.extract_strided_slice %1 {offsets = [0, 1, 2], sizes = [1, 14, 14], strides = [1, 1, 1]} : vector<1x16x16xf32> to vector<1x14x14xf32>
    %c0_11 = arith.constant 0 : index
    %c5 = arith.constant 5 : index
    %30 = memref.load %arg2[%c0_11, %c5] : memref<4x9xf32, #tpu.memory_space<smem>>
    %31 = vector.broadcast %30 : f32 to vector<1x14x14xf32>
    %32 = arith.mulf %29, %31 : vector<1x14x14xf32>
    %33 = arith.addf %28, %32 : vector<1x14x14xf32>
    %34 = vector.extract_strided_slice %1 {offsets = [0, 2, 0], sizes = [1, 14, 14], strides = [1, 1, 1]} : vector<1x16x16xf32> to vector<1x14x14xf32>
    %c0_12 = arith.constant 0 : index
    %c6 = arith.constant 6 : index
    %35 = memref.load %arg2[%c0_12, %c6] : memref<4x9xf32, #tpu.memory_space<smem>>
    %36 = vector.broadcast %35 : f32 to vector<1x14x14xf32>
    %37 = arith.mulf %34, %36 : vector<1x14x14xf32>
    %38 = arith.addf %33, %37 : vector<1x14x14xf32>
    %39 = vector.extract_strided_slice %1 {offsets = [0, 2, 1], sizes = [1, 14, 14], strides = [1, 1, 1]} : vector<1x16x16xf32> to vector<1x14x14xf32>
    %c0_13 = arith.constant 0 : index
    %c7 = arith.constant 7 : index
    %40 = memref.load %arg2[%c0_13, %c7] : memref<4x9xf32, #tpu.memory_space<smem>>
    %41 = vector.broadcast %40 : f32 to vector<1x14x14xf32>
    %42 = arith.mulf %39, %41 : vector<1x14x14xf32>
    %43 = arith.addf %38, %42 : vector<1x14x14xf32>
    %44 = vector.extract_strided_slice %1 {offsets = [0, 2, 2], sizes = [1, 14, 14], strides = [1, 1, 1]} : vector<1x16x16xf32> to vector<1x14x14xf32>
    %c0_14 = arith.constant 0 : index
    %c8 = arith.constant 8 : index
    %45 = memref.load %arg2[%c0_14, %c8] : memref<4x9xf32, #tpu.memory_space<smem>>
    %46 = vector.broadcast %45 : f32 to vector<1x14x14xf32>
    %47 = arith.mulf %44, %46 : vector<1x14x14xf32>
    %48 = arith.addf %43, %47 : vector<1x14x14xf32>
    %c0_15 = arith.constant 0 : index
    %c1_16 = arith.constant 1 : index
    %c0_17 = arith.constant 0 : index
    %c0_18 = arith.constant 0 : index
    %49 = vector.load %arg1[%c0_15, %c1_16, %c0_17, %c0_18] : memref<1x4x16x16xf32, #tpu.memory_space<vmem>>, vector<1x1x16x16xf32>
    %50 = vector.shape_cast %49 : vector<1x1x16x16xf32> to vector<1x16x16xf32>
    %51 = vector.extract_strided_slice %50 {offsets = [0, 0, 0], sizes = [1, 14, 14], strides = [1, 1, 1]} : vector<1x16x16xf32> to vector<1x14x14xf32>
    %c1_19 = arith.constant 1 : index
    %c0_20 = arith.constant 0 : index
    %52 = memref.load %arg2[%c1_19, %c0_20] : memref<4x9xf32, #tpu.memory_space<smem>>
    %53 = vector.broadcast %52 : f32 to vector<1x14x14xf32>
    %54 = arith.mulf %51, %53 : vector<1x14x14xf32>
    %c0_21 = arith.constant 0 : index
    %c1_22 = arith.constant 1 : index
    %55 = memref.load %arg3[%c0_21, %c1_22] : memref<1x4xf32, #tpu.memory_space<smem>>
    %56 = vector.broadcast %55 : f32 to vector<1x14x14xf32>
    %57 = arith.addf %54, %56 : vector<1x14x14xf32>
    %58 = vector.extract_strided_slice %50 {offsets = [0, 0, 1], sizes = [1, 14, 14], strides = [1, 1, 1]} : vector<1x16x16xf32> to vector<1x14x14xf32>
    %c1_23 = arith.constant 1 : index
    %c1_24 = arith.constant 1 : index
    %59 = memref.load %arg2[%c1_23, %c1_24] : memref<4x9xf32, #tpu.memory_space<smem>>
    %60 = vector.broadcast %59 : f32 to vector<1x14x14xf32>
    %61 = arith.mulf %58, %60 : vector<1x14x14xf32>
    %62 = arith.addf %57, %61 : vector<1x14x14xf32>
    %63 = vector.extract_strided_slice %50 {offsets = [0, 0, 2], sizes = [1, 14, 14], strides = [1, 1, 1]} : vector<1x16x16xf32> to vector<1x14x14xf32>
    %c1_25 = arith.constant 1 : index
    %c2_26 = arith.constant 2 : index
    %64 = memref.load %arg2[%c1_25, %c2_26] : memref<4x9xf32, #tpu.memory_space<smem>>
    %65 = vector.broadcast %64 : f32 to vector<1x14x14xf32>
    %66 = arith.mulf %63, %65 : vector<1x14x14xf32>
    %67 = arith.addf %62, %66 : vector<1x14x14xf32>
    %68 = vector.extract_strided_slice %50 {offsets = [0, 1, 0], sizes = [1, 14, 14], strides = [1, 1, 1]} : vector<1x16x16xf32> to vector<1x14x14xf32>
    %c1_27 = arith.constant 1 : index
    %c3_28 = arith.constant 3 : index
    %69 = memref.load %arg2[%c1_27, %c3_28] : memref<4x9xf32, #tpu.memory_space<smem>>
    %70 = vector.broadcast %69 : f32 to vector<1x14x14xf32>
    %71 = arith.mulf %68, %70 : vector<1x14x14xf32>
    %72 = arith.addf %67, %71 : vector<1x14x14xf32>
    %73 = vector.extract_strided_slice %50 {offsets = [0, 1, 1], sizes = [1, 14, 14], strides = [1, 1, 1]} : vector<1x16x16xf32> to vector<1x14x14xf32>
    %c1_29 = arith.constant 1 : index
    %c4_30 = arith.constant 4 : index
    %74 = memref.load %arg2[%c1_29, %c4_30] : memref<4x9xf32, #tpu.memory_space<smem>>
    %75 = vector.broadcast %74 : f32 to vector<1x14x14xf32>
    %76 = arith.mulf %73, %75 : vector<1x14x14xf32>
    %77 = arith.addf %72, %76 : vector<1x14x14xf32>
    %78 = vector.extract_strided_slice %50 {offsets = [0, 1, 2], sizes = [1, 14, 14], strides = [1, 1, 1]} : vector<1x16x16xf32> to vector<1x14x14xf32>
    %c1_31 = arith.constant 1 : index
    %c5_32 = arith.constant 5 : index
    %79 = memref.load %arg2[%c1_31, %c5_32] : memref<4x9xf32, #tpu.memory_space<smem>>
    %80 = vector.broadcast %79 : f32 to vector<1x14x14xf32>
    %81 = arith.mulf %78, %80 : vector<1x14x14xf32>
    %82 = arith.addf %77, %81 : vector<1x14x14xf32>
    %83 = vector.extract_strided_slice %50 {offsets = [0, 2, 0], sizes = [1, 14, 14], strides = [1, 1, 1]} : vector<1x16x16xf32> to vector<1x14x14xf32>
    %c1_33 = arith.constant 1 : index
    %c6_34 = arith.constant 6 : index
    %84 = memref.load %arg2[%c1_33, %c6_34] : memref<4x9xf32, #tpu.memory_space<smem>>
    %85 = vector.broadcast %84 : f32 to vector<1x14x14xf32>
    %86 = arith.mulf %83, %85 : vector<1x14x14xf32>
    %87 = arith.addf %82, %86 : vector<1x14x14xf32>
    %88 = vector.extract_strided_slice %50 {offsets = [0, 2, 1], sizes = [1, 14, 14], strides = [1, 1, 1]} : vector<1x16x16xf32> to vector<1x14x14xf32>
    %c1_35 = arith.constant 1 : index
    %c7_36 = arith.constant 7 : index
    %89 = memref.load %arg2[%c1_35, %c7_36] : memref<4x9xf32, #tpu.memory_space<smem>>
    %90 = vector.broadcast %89 : f32 to vector<1x14x14xf32>
    %91 = arith.mulf %88, %90 : vector<1x14x14xf32>
    %92 = arith.addf %87, %91 : vector<1x14x14xf32>
    %93 = vector.extract_strided_slice %50 {offsets = [0, 2, 2], sizes = [1, 14, 14], strides = [1, 1, 1]} : vector<1x16x16xf32> to vector<1x14x14xf32>
    %c1_37 = arith.constant 1 : index
    %c8_38 = arith.constant 8 : index
    %94 = memref.load %arg2[%c1_37, %c8_38] : memref<4x9xf32, #tpu.memory_space<smem>>
    %95 = vector.broadcast %94 : f32 to vector<1x14x14xf32>
    %96 = arith.mulf %93, %95 : vector<1x14x14xf32>
    %97 = arith.addf %92, %96 : vector<1x14x14xf32>
    %c0_39 = arith.constant 0 : index
    %c2_40 = arith.constant 2 : index
    %c0_41 = arith.constant 0 : index
    %c0_42 = arith.constant 0 : index
    %98 = vector.load %arg1[%c0_39, %c2_40, %c0_41, %c0_42] : memref<1x4x16x16xf32, #tpu.memory_space<vmem>>, vector<1x1x16x16xf32>
    %99 = vector.shape_cast %98 : vector<1x1x16x16xf32> to vector<1x16x16xf32>
    %100 = vector.extract_strided_slice %99 {offsets = [0, 0, 0], sizes = [1, 14, 14], strides = [1, 1, 1]} : vector<1x16x16xf32> to vector<1x14x14xf32>
    %c2_43 = arith.constant 2 : index
    %c0_44 = arith.constant 0 : index
    %101 = memref.load %arg2[%c2_43, %c0_44] : memref<4x9xf32, #tpu.memory_space<smem>>
    %102 = vector.broadcast %101 : f32 to vector<1x14x14xf32>
    %103 = arith.mulf %100, %102 : vector<1x14x14xf32>
    %c0_45 = arith.constant 0 : index
    %c2_46 = arith.constant 2 : index
    %104 = memref.load %arg3[%c0_45, %c2_46] : memref<1x4xf32, #tpu.memory_space<smem>>
    %105 = vector.broadcast %104 : f32 to vector<1x14x14xf32>
    %106 = arith.addf %103, %105 : vector<1x14x14xf32>
    %107 = vector.extract_strided_slice %99 {offsets = [0, 0, 1], sizes = [1, 14, 14], strides = [1, 1, 1]} : vector<1x16x16xf32> to vector<1x14x14xf32>
    %c2_47 = arith.constant 2 : index
    %c1_48 = arith.constant 1 : index
    %108 = memref.load %arg2[%c2_47, %c1_48] : memref<4x9xf32, #tpu.memory_space<smem>>
    %109 = vector.broadcast %108 : f32 to vector<1x14x14xf32>
    %110 = arith.mulf %107, %109 : vector<1x14x14xf32>
    %111 = arith.addf %106, %110 : vector<1x14x14xf32>
    %112 = vector.extract_strided_slice %99 {offsets = [0, 0, 2], sizes = [1, 14, 14], strides = [1, 1, 1]} : vector<1x16x16xf32> to vector<1x14x14xf32>
    %c2_49 = arith.constant 2 : index
    %c2_50 = arith.constant 2 : index
    %113 = memref.load %arg2[%c2_49, %c2_50] : memref<4x9xf32, #tpu.memory_space<smem>>
    %114 = vector.broadcast %113 : f32 to vector<1x14x14xf32>
    %115 = arith.mulf %112, %114 : vector<1x14x14xf32>
    %116 = arith.addf %111, %115 : vector<1x14x14xf32>
    %117 = vector.extract_strided_slice %99 {offsets = [0, 1, 0], sizes = [1, 14, 14], strides = [1, 1, 1]} : vector<1x16x16xf32> to vector<1x14x14xf32>
    %c2_51 = arith.constant 2 : index
    %c3_52 = arith.constant 3 : index
    %118 = memref.load %arg2[%c2_51, %c3_52] : memref<4x9xf32, #tpu.memory_space<smem>>
    %119 = vector.broadcast %118 : f32 to vector<1x14x14xf32>
    %120 = arith.mulf %117, %119 : vector<1x14x14xf32>
    %121 = arith.addf %116, %120 : vector<1x14x14xf32>
    %122 = vector.extract_strided_slice %99 {offsets = [0, 1, 1], sizes = [1, 14, 14], strides = [1, 1, 1]} : vector<1x16x16xf32> to vector<1x14x14xf32>
    %c2_53 = arith.constant 2 : index
    %c4_54 = arith.constant 4 : index
    %123 = memref.load %arg2[%c2_53, %c4_54] : memref<4x9xf32, #tpu.memory_space<smem>>
    %124 = vector.broadcast %123 : f32 to vector<1x14x14xf32>
    %125 = arith.mulf %122, %124 : vector<1x14x14xf32>
    %126 = arith.addf %121, %125 : vector<1x14x14xf32>
    %127 = vector.extract_strided_slice %99 {offsets = [0, 1, 2], sizes = [1, 14, 14], strides = [1, 1, 1]} : vector<1x16x16xf32> to vector<1x14x14xf32>
    %c2_55 = arith.constant 2 : index
    %c5_56 = arith.constant 5 : index
    %128 = memref.load %arg2[%c2_55, %c5_56] : memref<4x9xf32, #tpu.memory_space<smem>>
    %129 = vector.broadcast %128 : f32 to vector<1x14x14xf32>
    %130 = arith.mulf %127, %129 : vector<1x14x14xf32>
    %131 = arith.addf %126, %130 : vector<1x14x14xf32>
    %132 = vector.extract_strided_slice %99 {offsets = [0, 2, 0], sizes = [1, 14, 14], strides = [1, 1, 1]} : vector<1x16x16xf32> to vector<1x14x14xf32>
    %c2_57 = arith.constant 2 : index
    %c6_58 = arith.constant 6 : index
    %133 = memref.load %arg2[%c2_57, %c6_58] : memref<4x9xf32, #tpu.memory_space<smem>>
    %134 = vector.broadcast %133 : f32 to vector<1x14x14xf32>
    %135 = arith.mulf %132, %134 : vector<1x14x14xf32>
    %136 = arith.addf %131, %135 : vector<1x14x14xf32>
    %137 = vector.extract_strided_slice %99 {offsets = [0, 2, 1], sizes = [1, 14, 14], strides = [1, 1, 1]} : vector<1x16x16xf32> to vector<1x14x14xf32>
    %c2_59 = arith.constant 2 : index
    %c7_60 = arith.constant 7 : index
    %138 = memref.load %arg2[%c2_59, %c7_60] : memref<4x9xf32, #tpu.memory_space<smem>>
    %139 = vector.broadcast %138 : f32 to vector<1x14x14xf32>
    %140 = arith.mulf %137, %139 : vector<1x14x14xf32>
    %141 = arith.addf %136, %140 : vector<1x14x14xf32>
    %142 = vector.extract_strided_slice %99 {offsets = [0, 2, 2], sizes = [1, 14, 14], strides = [1, 1, 1]} : vector<1x16x16xf32> to vector<1x14x14xf32>
    %c2_61 = arith.constant 2 : index
    %c8_62 = arith.constant 8 : index
    %143 = memref.load %arg2[%c2_61, %c8_62] : memref<4x9xf32, #tpu.memory_space<smem>>
    %144 = vector.broadcast %143 : f32 to vector<1x14x14xf32>
    %145 = arith.mulf %142, %144 : vector<1x14x14xf32>
    %146 = arith.addf %141, %145 : vector<1x14x14xf32>
    %c0_63 = arith.constant 0 : index
    %c3_64 = arith.constant 3 : index
    %c0_65 = arith.constant 0 : index
    %c0_66 = arith.constant 0 : index
    %147 = vector.load %arg1[%c0_63, %c3_64, %c0_65, %c0_66] : memref<1x4x16x16xf32, #tpu.memory_space<vmem>>, vector<1x1x16x16xf32>
    %148 = vector.shape_cast %147 : vector<1x1x16x16xf32> to vector<1x16x16xf32>
    %149 = vector.extract_strided_slice %148 {offsets = [0, 0, 0], sizes = [1, 14, 14], strides = [1, 1, 1]} : vector<1x16x16xf32> to vector<1x14x14xf32>
    %c3_67 = arith.constant 3 : index
    %c0_68 = arith.constant 0 : index
    %150 = memref.load %arg2[%c3_67, %c0_68] : memref<4x9xf32, #tpu.memory_space<smem>>
    %151 = vector.broadcast %150 : f32 to vector<1x14x14xf32>
    %152 = arith.mulf %149, %151 : vector<1x14x14xf32>
    %c0_69 = arith.constant 0 : index
    %c3_70 = arith.constant 3 : index
    %153 = memref.load %arg3[%c0_69, %c3_70] : memref<1x4xf32, #tpu.memory_space<smem>>
    %154 = vector.broadcast %153 : f32 to vector<1x14x14xf32>
    %155 = arith.addf %152, %154 : vector<1x14x14xf32>
    %156 = vector.extract_strided_slice %148 {offsets = [0, 0, 1], sizes = [1, 14, 14], strides = [1, 1, 1]} : vector<1x16x16xf32> to vector<1x14x14xf32>
    %c3_71 = arith.constant 3 : index
    %c1_72 = arith.constant 1 : index
    %157 = memref.load %arg2[%c3_71, %c1_72] : memref<4x9xf32, #tpu.memory_space<smem>>
    %158 = vector.broadcast %157 : f32 to vector<1x14x14xf32>
    %159 = arith.mulf %156, %158 : vector<1x14x14xf32>
    %160 = arith.addf %155, %159 : vector<1x14x14xf32>
    %161 = vector.extract_strided_slice %148 {offsets = [0, 0, 2], sizes = [1, 14, 14], strides = [1, 1, 1]} : vector<1x16x16xf32> to vector<1x14x14xf32>
    %c3_73 = arith.constant 3 : index
    %c2_74 = arith.constant 2 : index
    %162 = memref.load %arg2[%c3_73, %c2_74] : memref<4x9xf32, #tpu.memory_space<smem>>
    %163 = vector.broadcast %162 : f32 to vector<1x14x14xf32>
    %164 = arith.mulf %161, %163 : vector<1x14x14xf32>
    %165 = arith.addf %160, %164 : vector<1x14x14xf32>
    %166 = vector.extract_strided_slice %148 {offsets = [0, 1, 0], sizes = [1, 14, 14], strides = [1, 1, 1]} : vector<1x16x16xf32> to vector<1x14x14xf32>
    %c3_75 = arith.constant 3 : index
    %c3_76 = arith.constant 3 : index
    %167 = memref.load %arg2[%c3_75, %c3_76] : memref<4x9xf32, #tpu.memory_space<smem>>
    %168 = vector.broadcast %167 : f32 to vector<1x14x14xf32>
    %169 = arith.mulf %166, %168 : vector<1x14x14xf32>
    %170 = arith.addf %165, %169 : vector<1x14x14xf32>
    %171 = vector.extract_strided_slice %148 {offsets = [0, 1, 1], sizes = [1, 14, 14], strides = [1, 1, 1]} : vector<1x16x16xf32> to vector<1x14x14xf32>
    %c3_77 = arith.constant 3 : index
    %c4_78 = arith.constant 4 : index
    %172 = memref.load %arg2[%c3_77, %c4_78] : memref<4x9xf32, #tpu.memory_space<smem>>
    %173 = vector.broadcast %172 : f32 to vector<1x14x14xf32>
    %174 = arith.mulf %171, %173 : vector<1x14x14xf32>
    %175 = arith.addf %170, %174 : vector<1x14x14xf32>
    %176 = vector.extract_strided_slice %148 {offsets = [0, 1, 2], sizes = [1, 14, 14], strides = [1, 1, 1]} : vector<1x16x16xf32> to vector<1x14x14xf32>
    %c3_79 = arith.constant 3 : index
    %c5_80 = arith.constant 5 : index
    %177 = memref.load %arg2[%c3_79, %c5_80] : memref<4x9xf32, #tpu.memory_space<smem>>
    %178 = vector.broadcast %177 : f32 to vector<1x14x14xf32>
    %179 = arith.mulf %176, %178 : vector<1x14x14xf32>
    %180 = arith.addf %175, %179 : vector<1x14x14xf32>
    %181 = vector.extract_strided_slice %148 {offsets = [0, 2, 0], sizes = [1, 14, 14], strides = [1, 1, 1]} : vector<1x16x16xf32> to vector<1x14x14xf32>
    %c3_81 = arith.constant 3 : index
    %c6_82 = arith.constant 6 : index
    %182 = memref.load %arg2[%c3_81, %c6_82] : memref<4x9xf32, #tpu.memory_space<smem>>
    %183 = vector.broadcast %182 : f32 to vector<1x14x14xf32>
    %184 = arith.mulf %181, %183 : vector<1x14x14xf32>
    %185 = arith.addf %180, %184 : vector<1x14x14xf32>
    %186 = vector.extract_strided_slice %148 {offsets = [0, 2, 1], sizes = [1, 14, 14], strides = [1, 1, 1]} : vector<1x16x16xf32> to vector<1x14x14xf32>
    %c3_83 = arith.constant 3 : index
    %c7_84 = arith.constant 7 : index
    %187 = memref.load %arg2[%c3_83, %c7_84] : memref<4x9xf32, #tpu.memory_space<smem>>
    %188 = vector.broadcast %187 : f32 to vector<1x14x14xf32>
    %189 = arith.mulf %186, %188 : vector<1x14x14xf32>
    %190 = arith.addf %185, %189 : vector<1x14x14xf32>
    %191 = vector.extract_strided_slice %148 {offsets = [0, 2, 2], sizes = [1, 14, 14], strides = [1, 1, 1]} : vector<1x16x16xf32> to vector<1x14x14xf32>
    %c3_85 = arith.constant 3 : index
    %c8_86 = arith.constant 8 : index
    %192 = memref.load %arg2[%c3_85, %c8_86] : memref<4x9xf32, #tpu.memory_space<smem>>
    %193 = vector.broadcast %192 : f32 to vector<1x14x14xf32>
    %194 = arith.mulf %191, %193 : vector<1x14x14xf32>
    %195 = arith.addf %190, %194 : vector<1x14x14xf32>
    %c0_87 = arith.constant 0 : index
    %c0_88 = arith.constant 0 : index
    %196 = memref.load %arg4[%c0_87, %c0_88] : memref<8x4xf32, #tpu.memory_space<smem>>
    %197 = vector.broadcast %196 : f32 to vector<1x14x14xf32>
    %198 = arith.mulf %48, %197 : vector<1x14x14xf32>
    %c0_89 = arith.constant 0 : index
    %c0_90 = arith.constant 0 : index
    %199 = memref.load %arg5[%c0_89, %c0_90] : memref<1x8xf32, #tpu.memory_space<smem>>
    %200 = vector.broadcast %199 : f32 to vector<1x14x14xf32>
    %201 = arith.addf %198, %200 : vector<1x14x14xf32>
    %c0_91 = arith.constant 0 : index
    %c1_92 = arith.constant 1 : index
    %202 = memref.load %arg4[%c0_91, %c1_92] : memref<8x4xf32, #tpu.memory_space<smem>>
    %203 = vector.broadcast %202 : f32 to vector<1x14x14xf32>
    %204 = arith.mulf %97, %203 : vector<1x14x14xf32>
    %205 = arith.addf %201, %204 : vector<1x14x14xf32>
    %c0_93 = arith.constant 0 : index
    %c2_94 = arith.constant 2 : index
    %206 = memref.load %arg4[%c0_93, %c2_94] : memref<8x4xf32, #tpu.memory_space<smem>>
    %207 = vector.broadcast %206 : f32 to vector<1x14x14xf32>
    %208 = arith.mulf %146, %207 : vector<1x14x14xf32>
    %209 = arith.addf %205, %208 : vector<1x14x14xf32>
    %c0_95 = arith.constant 0 : index
    %c3_96 = arith.constant 3 : index
    %210 = memref.load %arg4[%c0_95, %c3_96] : memref<8x4xf32, #tpu.memory_space<smem>>
    %211 = vector.broadcast %210 : f32 to vector<1x14x14xf32>
    %212 = arith.mulf %195, %211 : vector<1x14x14xf32>
    %213 = arith.addf %209, %212 : vector<1x14x14xf32>
    %c1_97 = arith.constant 1 : index
    %c0_98 = arith.constant 0 : index
    %214 = memref.load %arg4[%c1_97, %c0_98] : memref<8x4xf32, #tpu.memory_space<smem>>
    %215 = vector.broadcast %214 : f32 to vector<1x14x14xf32>
    %216 = arith.mulf %48, %215 : vector<1x14x14xf32>
    %c0_99 = arith.constant 0 : index
    %c1_100 = arith.constant 1 : index
    %217 = memref.load %arg5[%c0_99, %c1_100] : memref<1x8xf32, #tpu.memory_space<smem>>
    %218 = vector.broadcast %217 : f32 to vector<1x14x14xf32>
    %219 = arith.addf %216, %218 : vector<1x14x14xf32>
    %c1_101 = arith.constant 1 : index
    %c1_102 = arith.constant 1 : index
    %220 = memref.load %arg4[%c1_101, %c1_102] : memref<8x4xf32, #tpu.memory_space<smem>>
    %221 = vector.broadcast %220 : f32 to vector<1x14x14xf32>
    %222 = arith.mulf %97, %221 : vector<1x14x14xf32>
    %223 = arith.addf %219, %222 : vector<1x14x14xf32>
    %c1_103 = arith.constant 1 : index
    %c2_104 = arith.constant 2 : index
    %224 = memref.load %arg4[%c1_103, %c2_104] : memref<8x4xf32, #tpu.memory_space<smem>>
    %225 = vector.broadcast %224 : f32 to vector<1x14x14xf32>
    %226 = arith.mulf %146, %225 : vector<1x14x14xf32>
    %227 = arith.addf %223, %226 : vector<1x14x14xf32>
    %c1_105 = arith.constant 1 : index
    %c3_106 = arith.constant 3 : index
    %228 = memref.load %arg4[%c1_105, %c3_106] : memref<8x4xf32, #tpu.memory_space<smem>>
    %229 = vector.broadcast %228 : f32 to vector<1x14x14xf32>
    %230 = arith.mulf %195, %229 : vector<1x14x14xf32>
    %231 = arith.addf %227, %230 : vector<1x14x14xf32>
    %c2_107 = arith.constant 2 : index
    %c0_108 = arith.constant 0 : index
    %232 = memref.load %arg4[%c2_107, %c0_108] : memref<8x4xf32, #tpu.memory_space<smem>>
    %233 = vector.broadcast %232 : f32 to vector<1x14x14xf32>
    %234 = arith.mulf %48, %233 : vector<1x14x14xf32>
    %c0_109 = arith.constant 0 : index
    %c2_110 = arith.constant 2 : index
    %235 = memref.load %arg5[%c0_109, %c2_110] : memref<1x8xf32, #tpu.memory_space<smem>>
    %236 = vector.broadcast %235 : f32 to vector<1x14x14xf32>
    %237 = arith.addf %234, %236 : vector<1x14x14xf32>
    %c2_111 = arith.constant 2 : index
    %c1_112 = arith.constant 1 : index
    %238 = memref.load %arg4[%c2_111, %c1_112] : memref<8x4xf32, #tpu.memory_space<smem>>
    %239 = vector.broadcast %238 : f32 to vector<1x14x14xf32>
    %240 = arith.mulf %97, %239 : vector<1x14x14xf32>
    %241 = arith.addf %237, %240 : vector<1x14x14xf32>
    %c2_113 = arith.constant 2 : index
    %c2_114 = arith.constant 2 : index
    %242 = memref.load %arg4[%c2_113, %c2_114] : memref<8x4xf32, #tpu.memory_space<smem>>
    %243 = vector.broadcast %242 : f32 to vector<1x14x14xf32>
    %244 = arith.mulf %146, %243 : vector<1x14x14xf32>
    %245 = arith.addf %241, %244 : vector<1x14x14xf32>
    %c2_115 = arith.constant 2 : index
    %c3_116 = arith.constant 3 : index
    %246 = memref.load %arg4[%c2_115, %c3_116] : memref<8x4xf32, #tpu.memory_space<smem>>
    %247 = vector.broadcast %246 : f32 to vector<1x14x14xf32>
    %248 = arith.mulf %195, %247 : vector<1x14x14xf32>
    %249 = arith.addf %245, %248 : vector<1x14x14xf32>
    %c3_117 = arith.constant 3 : index
    %c0_118 = arith.constant 0 : index
    %250 = memref.load %arg4[%c3_117, %c0_118] : memref<8x4xf32, #tpu.memory_space<smem>>
    %251 = vector.broadcast %250 : f32 to vector<1x14x14xf32>
    %252 = arith.mulf %48, %251 : vector<1x14x14xf32>
    %c0_119 = arith.constant 0 : index
    %c3_120 = arith.constant 3 : index
    %253 = memref.load %arg5[%c0_119, %c3_120] : memref<1x8xf32, #tpu.memory_space<smem>>
    %254 = vector.broadcast %253 : f32 to vector<1x14x14xf32>
    %255 = arith.addf %252, %254 : vector<1x14x14xf32>
    %c3_121 = arith.constant 3 : index
    %c1_122 = arith.constant 1 : index
    %256 = memref.load %arg4[%c3_121, %c1_122] : memref<8x4xf32, #tpu.memory_space<smem>>
    %257 = vector.broadcast %256 : f32 to vector<1x14x14xf32>
    %258 = arith.mulf %97, %257 : vector<1x14x14xf32>
    %259 = arith.addf %255, %258 : vector<1x14x14xf32>
    %c3_123 = arith.constant 3 : index
    %c2_124 = arith.constant 2 : index
    %260 = memref.load %arg4[%c3_123, %c2_124] : memref<8x4xf32, #tpu.memory_space<smem>>
    %261 = vector.broadcast %260 : f32 to vector<1x14x14xf32>
    %262 = arith.mulf %146, %261 : vector<1x14x14xf32>
    %263 = arith.addf %259, %262 : vector<1x14x14xf32>
    %c3_125 = arith.constant 3 : index
    %c3_126 = arith.constant 3 : index
    %264 = memref.load %arg4[%c3_125, %c3_126] : memref<8x4xf32, #tpu.memory_space<smem>>
    %265 = vector.broadcast %264 : f32 to vector<1x14x14xf32>
    %266 = arith.mulf %195, %265 : vector<1x14x14xf32>
    %267 = arith.addf %263, %266 : vector<1x14x14xf32>
    %c4_127 = arith.constant 4 : index
    %c0_128 = arith.constant 0 : index
    %268 = memref.load %arg4[%c4_127, %c0_128] : memref<8x4xf32, #tpu.memory_space<smem>>
    %269 = vector.broadcast %268 : f32 to vector<1x14x14xf32>
    %270 = arith.mulf %48, %269 : vector<1x14x14xf32>
    %c0_129 = arith.constant 0 : index
    %c4_130 = arith.constant 4 : index
    %271 = memref.load %arg5[%c0_129, %c4_130] : memref<1x8xf32, #tpu.memory_space<smem>>
    %272 = vector.broadcast %271 : f32 to vector<1x14x14xf32>
    %273 = arith.addf %270, %272 : vector<1x14x14xf32>
    %c4_131 = arith.constant 4 : index
    %c1_132 = arith.constant 1 : index
    %274 = memref.load %arg4[%c4_131, %c1_132] : memref<8x4xf32, #tpu.memory_space<smem>>
    %275 = vector.broadcast %274 : f32 to vector<1x14x14xf32>
    %276 = arith.mulf %97, %275 : vector<1x14x14xf32>
    %277 = arith.addf %273, %276 : vector<1x14x14xf32>
    %c4_133 = arith.constant 4 : index
    %c2_134 = arith.constant 2 : index
    %278 = memref.load %arg4[%c4_133, %c2_134] : memref<8x4xf32, #tpu.memory_space<smem>>
    %279 = vector.broadcast %278 : f32 to vector<1x14x14xf32>
    %280 = arith.mulf %146, %279 : vector<1x14x14xf32>
    %281 = arith.addf %277, %280 : vector<1x14x14xf32>
    %c4_135 = arith.constant 4 : index
    %c3_136 = arith.constant 3 : index
    %282 = memref.load %arg4[%c4_135, %c3_136] : memref<8x4xf32, #tpu.memory_space<smem>>
    %283 = vector.broadcast %282 : f32 to vector<1x14x14xf32>
    %284 = arith.mulf %195, %283 : vector<1x14x14xf32>
    %285 = arith.addf %281, %284 : vector<1x14x14xf32>
    %c5_137 = arith.constant 5 : index
    %c0_138 = arith.constant 0 : index
    %286 = memref.load %arg4[%c5_137, %c0_138] : memref<8x4xf32, #tpu.memory_space<smem>>
    %287 = vector.broadcast %286 : f32 to vector<1x14x14xf32>
    %288 = arith.mulf %48, %287 : vector<1x14x14xf32>
    %c0_139 = arith.constant 0 : index
    %c5_140 = arith.constant 5 : index
    %289 = memref.load %arg5[%c0_139, %c5_140] : memref<1x8xf32, #tpu.memory_space<smem>>
    %290 = vector.broadcast %289 : f32 to vector<1x14x14xf32>
    %291 = arith.addf %288, %290 : vector<1x14x14xf32>
    %c5_141 = arith.constant 5 : index
    %c1_142 = arith.constant 1 : index
    %292 = memref.load %arg4[%c5_141, %c1_142] : memref<8x4xf32, #tpu.memory_space<smem>>
    %293 = vector.broadcast %292 : f32 to vector<1x14x14xf32>
    %294 = arith.mulf %97, %293 : vector<1x14x14xf32>
    %295 = arith.addf %291, %294 : vector<1x14x14xf32>
    %c5_143 = arith.constant 5 : index
    %c2_144 = arith.constant 2 : index
    %296 = memref.load %arg4[%c5_143, %c2_144] : memref<8x4xf32, #tpu.memory_space<smem>>
    %297 = vector.broadcast %296 : f32 to vector<1x14x14xf32>
    %298 = arith.mulf %146, %297 : vector<1x14x14xf32>
    %299 = arith.addf %295, %298 : vector<1x14x14xf32>
    %c5_145 = arith.constant 5 : index
    %c3_146 = arith.constant 3 : index
    %300 = memref.load %arg4[%c5_145, %c3_146] : memref<8x4xf32, #tpu.memory_space<smem>>
    %301 = vector.broadcast %300 : f32 to vector<1x14x14xf32>
    %302 = arith.mulf %195, %301 : vector<1x14x14xf32>
    %303 = arith.addf %299, %302 : vector<1x14x14xf32>
    %c6_147 = arith.constant 6 : index
    %c0_148 = arith.constant 0 : index
    %304 = memref.load %arg4[%c6_147, %c0_148] : memref<8x4xf32, #tpu.memory_space<smem>>
    %305 = vector.broadcast %304 : f32 to vector<1x14x14xf32>
    %306 = arith.mulf %48, %305 : vector<1x14x14xf32>
    %c0_149 = arith.constant 0 : index
    %c6_150 = arith.constant 6 : index
    %307 = memref.load %arg5[%c0_149, %c6_150] : memref<1x8xf32, #tpu.memory_space<smem>>
    %308 = vector.broadcast %307 : f32 to vector<1x14x14xf32>
    %309 = arith.addf %306, %308 : vector<1x14x14xf32>
    %c6_151 = arith.constant 6 : index
    %c1_152 = arith.constant 1 : index
    %310 = memref.load %arg4[%c6_151, %c1_152] : memref<8x4xf32, #tpu.memory_space<smem>>
    %311 = vector.broadcast %310 : f32 to vector<1x14x14xf32>
    %312 = arith.mulf %97, %311 : vector<1x14x14xf32>
    %313 = arith.addf %309, %312 : vector<1x14x14xf32>
    %c6_153 = arith.constant 6 : index
    %c2_154 = arith.constant 2 : index
    %314 = memref.load %arg4[%c6_153, %c2_154] : memref<8x4xf32, #tpu.memory_space<smem>>
    %315 = vector.broadcast %314 : f32 to vector<1x14x14xf32>
    %316 = arith.mulf %146, %315 : vector<1x14x14xf32>
    %317 = arith.addf %313, %316 : vector<1x14x14xf32>
    %c6_155 = arith.constant 6 : index
    %c3_156 = arith.constant 3 : index
    %318 = memref.load %arg4[%c6_155, %c3_156] : memref<8x4xf32, #tpu.memory_space<smem>>
    %319 = vector.broadcast %318 : f32 to vector<1x14x14xf32>
    %320 = arith.mulf %195, %319 : vector<1x14x14xf32>
    %321 = arith.addf %317, %320 : vector<1x14x14xf32>
    %c7_157 = arith.constant 7 : index
    %c0_158 = arith.constant 0 : index
    %322 = memref.load %arg4[%c7_157, %c0_158] : memref<8x4xf32, #tpu.memory_space<smem>>
    %323 = vector.broadcast %322 : f32 to vector<1x14x14xf32>
    %324 = arith.mulf %48, %323 : vector<1x14x14xf32>
    %c0_159 = arith.constant 0 : index
    %c7_160 = arith.constant 7 : index
    %325 = memref.load %arg5[%c0_159, %c7_160] : memref<1x8xf32, #tpu.memory_space<smem>>
    %326 = vector.broadcast %325 : f32 to vector<1x14x14xf32>
    %327 = arith.addf %324, %326 : vector<1x14x14xf32>
    %c7_161 = arith.constant 7 : index
    %c1_162 = arith.constant 1 : index
    %328 = memref.load %arg4[%c7_161, %c1_162] : memref<8x4xf32, #tpu.memory_space<smem>>
    %329 = vector.broadcast %328 : f32 to vector<1x14x14xf32>
    %330 = arith.mulf %97, %329 : vector<1x14x14xf32>
    %331 = arith.addf %327, %330 : vector<1x14x14xf32>
    %c7_163 = arith.constant 7 : index
    %c2_164 = arith.constant 2 : index
    %332 = memref.load %arg4[%c7_163, %c2_164] : memref<8x4xf32, #tpu.memory_space<smem>>
    %333 = vector.broadcast %332 : f32 to vector<1x14x14xf32>
    %334 = arith.mulf %146, %333 : vector<1x14x14xf32>
    %335 = arith.addf %331, %334 : vector<1x14x14xf32>
    %c7_165 = arith.constant 7 : index
    %c3_166 = arith.constant 3 : index
    %336 = memref.load %arg4[%c7_165, %c3_166] : memref<8x4xf32, #tpu.memory_space<smem>>
    %337 = vector.broadcast %336 : f32 to vector<1x14x14xf32>
    %338 = arith.mulf %195, %337 : vector<1x14x14xf32>
    %339 = arith.addf %335, %338 : vector<1x14x14xf32>
    %340 = vector.shape_cast %213 : vector<1x14x14xf32> to vector<1x1x14x14xf32>
    %341 = vector.shape_cast %231 : vector<1x14x14xf32> to vector<1x1x14x14xf32>
    %342 = vector.shape_cast %249 : vector<1x14x14xf32> to vector<1x1x14x14xf32>
    %343 = vector.shape_cast %267 : vector<1x14x14xf32> to vector<1x1x14x14xf32>
    %344 = vector.shape_cast %285 : vector<1x14x14xf32> to vector<1x1x14x14xf32>
    %345 = vector.shape_cast %303 : vector<1x14x14xf32> to vector<1x1x14x14xf32>
    %346 = vector.shape_cast %321 : vector<1x14x14xf32> to vector<1x1x14x14xf32>
    %347 = vector.shape_cast %339 : vector<1x14x14xf32> to vector<1x1x14x14xf32>
    %348 = tpu.concatenate %340, %341, %342, %343, %344, %345, %346, %347 in 1 : vector<1x1x14x14xf32>, vector<1x1x14x14xf32>, vector<1x1x14x14xf32>, vector<1x1x14x14xf32>, vector<1x1x14x14xf32>, vector<1x1x14x14xf32>, vector<1x1x14x14xf32>, vector<1x1x14x14xf32> -> vector<1x8x14x14xf32>
    %c0_167 = arith.constant 0 : index
    %c0_168 = arith.constant 0 : index
    %c0_169 = arith.constant 0 : index
    %c0_170 = arith.constant 0 : index
    %349 = vector.load %arg6[%c0_167, %c0_168, %c0_169, %c0_170] : memref<1x8x14x14xf32, #tpu.memory_space<vmem>>, vector<1x8x14x14xf32>
    tpu.vector_store %arg6[%c0_167, %c0_168, %c0_169, %c0_170], %348 {strides = array<i32>} : memref<1x8x14x14xf32, #tpu.memory_space<vmem>>, vector<1x8x14x14xf32>,
    return
  }
  func.func @transform_0(%arg0: i32) -> (i32, i32, i32, i32) {
    %c0_i32 = arith.constant 0 : i32
    %c0_i32_0 = arith.constant 0 : i32
    %c0_i32_1 = arith.constant 0 : i32
    %c0_i32_2 = arith.constant 0 : i32
    return %arg0, %c0_i32, %c0_i32_0, %c0_i32_1 : i32, i32, i32, i32
  }
  func.func @transform_1(%arg0: i32) -> (i32, i32) {
    %c0_i32 = arith.constant 0 : i32
    %c0_i32_0 = arith.constant 0 : i32
    %c0_i32_1 = arith.constant 0 : i32
    return %c0_i32, %c0_i32_0 : i32, i32
  }
  func.func @transform_2(%arg0: i32) -> (i32, i32) {
    %c0_i32 = arith.constant 0 : i32
    %c0_i32_0 = arith.constant 0 : i32
    %c0_i32_1 = arith.constant 0 : i32
    return %c0_i32, %c0_i32_0 : i32, i32
  }
  func.func @transform_3(%arg0: i32) -> (i32, i32) {
    %c0_i32 = arith.constant 0 : i32
    %c0_i32_0 = arith.constant 0 : i32
    %c0_i32_1 = arith.constant 0 : i32
    return %c0_i32, %c0_i32_0 : i32, i32
  }
  func.func @transform_4(%arg0: i32) -> (i32, i32) {
    %c0_i32 = arith.constant 0 : i32
    %c0_i32_0 = arith.constant 0 : i32
    %c0_i32_1 = arith.constant 0 : i32
    return %c0_i32, %c0_i32_0 : i32, i32
  }
  func.func @transform_5(%arg0: i32) -> (i32, i32, i32, i32) {
    %c0_i32 = arith.constant 0 : i32
    %c0_i32_0 = arith.constant 0 : i32
    %c0_i32_1 = arith.constant 0 : i32
    %c0_i32_2 = arith.constant 0 : i32
    return %arg0, %c0_i32, %c0_i32_0, %c0_i32_1 : i32, i32, i32, i32
  }
}

</mosaic_0001>

<bundles_post_ra>
// kernel: tpu_custom_call.1
= control target key start
LH: loop header
LB: loop body
LE: loop exit
PB: predicated region body
PF: predicated region fallthrough
CT: control target
= control target key end

     0   :  { %s2379_s0 = inlined_call_operand.hbm [shape: f32[2,4,16,16], index: 0, kind: input, shape index: {}]   ;;  %s2380_s1 = inlined_call_operand.vmem [shape: f32[4,9], index: 1, kind: input, shape index: {}]   ;;  %s2381_s2 = inlined_call_operand.vmem [shape: f32[1,4], index: 2, kind: input, shape index: {}]   ;;  %s2382_s3 = inlined_call_operand.vmem [shape: f32[8,4], index: 3, kind: input, shape index: {}]   ;;  %s2383_s4 = inlined_call_operand.vmem [shape: f32[1,8], index: 4, kind: input, shape index: {}]   ;;  %s2384_s5 = inlined_call_operand.vmem [shape: f32[2,8,14,14], index: 5, kind: output, shape index: {}]  }
   0x1   :  { %2392 = sst [smem:[#allocation19_spill]] %s2379_s0 }
   0x2   :  { %2393 = sst [smem:[#allocation20_spill]] %s2380_s1 }
   0x3   :  { %2394 = sst [smem:[#allocation21_spill]] %s2381_s2 }
   0x4   :  { %2395 = sst [smem:[#allocation22_spill]] %s2382_s3 }
   0x5   :  { %2396 = sst [smem:[#allocation23_spill]] %s2383_s4 }
   0x6   :  { %10 = vsyncpa [#allocation3], 0 }
   0x7   :  { %12 = vsyncpa [#allocation3 + $0x1], 0 }
   0x8   :  { %13 = vsyncpa [#allocation4], 0 }
   0x9   :  { %14 = vsyncpa [#allocation7], 0 }
   0xa   :  { %15 = vsyncpa [#allocation10], 0  ;;  %s1527_s18 = smov 0   ;;  %s1529_s19 = smov 0  }
   0xb   :  { %s1531_s20 = smov 0   ;;  %s1533_s21 = smov 0  }
   0xc LB: > { %2397 = sst [smem:[#allocation15_spill]] %s1478_s19  ;;  %s1546_s22 = sadd.s32 4294967295, %s1486_s21   ;;  %s1486_s21 = sphi %s1533_s21, %s2418_s21   ;;  %s1482_s20 = sphi %s1531_s20, %s2421_s20   ;;  %s1478_s19 = sphi %s1529_s19, %s2420_s19   ;;  %s1474_s18 = sphi %s1527_s18, %s2419_s18  }
   0xd   : > { %2398 = sst [smem:[#allocation16_spill]] %s1482_s20  ;;  %p41_p0 = scmp.ne.s32.totalorder %s1478_s19, %s1474_s18 }
   0xe   : > { %p2385_p1 = scmp.eq.s32.totalorder %s1546_s22, 0  ;;  %p1165_p2 = scmp.ge.s32.totalorder %s1486_s21, 1 }
   0xf   : > { %p162_p3 = scmp.lt.s32.totalorder %s1486_s21, 3  ;;  %s2400_s2 = sld [smem:[#allocation21_spill]] }
  0x10   : > { %p1554_p4 = por %p2385_p1, %p41_p0  ;;  %s2402_s1 = sld [smem:[#allocation20_spill]] }
  0x11   : > { %p1561_p5 = pnand %p1165_p2, %p162_p3  ;;  %s2404_s3 = sld [smem:[#allocation22_spill]] }
  0x12   : > { %s2399_s23 = scalar_select %p1554_p4, 1, 0 }
  0x13   : > { %s2401_s27 = scalar_select %p1561_p5, 1, 0 }
  0x14   : > { %p1286_p6 = pneg %p1561_p5  ;;  %s2405_s4 = sld [smem:[#allocation23_spill]] }
  0x15   : > { %s186_s26 = sshll.u32 %s2400_s2, 4  ;;  %s187_s26 = int_to_ptr.vmem [resolvable:$true] %s186_s26 }
  0x16   : > { %s175_s30 = sshll.u32 %s2402_s1, 4  ;;  %p1572_p7 = pnand %p1286_p6, %p2385_p1  ;;  %s176_s30 = int_to_ptr.vmem [resolvable:$true] %s175_s30 }
  0x17   : > { %s197_s9 = sshll.u32 %s2404_s3, 4  ;;  %s1352_s13 = scalar_lea.vmem %s187_s26, 16  ;;  %s1579_s9 = int_to_ptr.vmem [resolvable:$true] %s197_s9 }
  0x18   : > { %p1353_p8 = scmp.ne.s32.totalorder %s187_s26, %s1352_s13  ;;  %p1354_p9 = pneg %p1572_p7 }
  0x19   : > { %p1360_p12 = scmp.lt.s32.totalorder %s187_s26, %s187_s26  ;;  %p1361_p13 = scmp.lt.s32.totalorder %s1352_s13, %s1352_s13 }
  0x1a   : > { %s208_s12 = sshll.u32 %s2405_s4, 4  ;;  %p1355_p10 = pnand %p1354_p9, %p1353_p8  ;;  %s209_s12 = int_to_ptr.vmem [resolvable:$true] %s208_s12 }
  0x1b   : > { %p1362_p0 = por %p1361_p13, %p1360_p12 }
  0x1c   : > { %p1356_p11 = pneg %p1355_p10 }
  0x1e   : > { %p1363_p2 = pnand %p1362_p0, %p1356_p11 }
  0x20   : > { %1366 = shalt.err (!%p1363_p2)
}
  0x21   : > { %s1488_s14 = smov [#allocation6]   ;;  %s1367_s15 = scalar_lea.vmem %s176_s30, 64 }
  0x22   : > { %1292 = dma.vmem_to_smem (!%p1572_p7), %s187_s26, 16, %s1488_s14, [#allocation7]  }
  0x23   : > { %p1368_p3 = scmp.ne.s32.totalorder %s176_s30, %s1367_s15  ;;  %p1375_p4 = scmp.lt.s32.totalorder %s176_s30, %s176_s30 }
  0x24   : > { %p1376_p5 = scmp.lt.s32.totalorder %s1367_s15, %s1367_s15 }
  0x25   : > { %p1370_p6 = pnand %p1368_p3, %p1354_p9 }
  0x26   : > { %p1377_p8 = por %p1376_p5, %p1375_p4 }
  0x27   : > { %p1371_p1 = pneg %p1370_p6 }
  0x29   : > { %p1378_p10 = pnand %p1377_p8, %p1371_p1 }
  0x2b   : > { %1381 = shalt.err (!%p1378_p10)
}
  0x2c   : > { %s1489_s16 = smov [#allocation5]   ;;  %s1382_s17 = scalar_lea.vmem %s1579_s9, 128 }
  0x2d   : > { %1289 = dma.vmem_to_smem (!%p1572_p7), %s176_s30, 64, %s1489_s16, [#allocation4]  }
  0x2e   : > { %p1383_p11 = scmp.ne.s32.totalorder %s1579_s9, %s1382_s17  ;;  %p1390_p0 = scmp.lt.s32.totalorder %s1579_s9, %s1579_s9 }
  0x2f   : > { %p1391_p2 = scmp.lt.s32.totalorder %s1382_s17, %s1382_s17 }
  0x30   : > { %p1385_p12 = pnand %p1383_p11, %p1354_p9 }
  0x31   : > { %p1392_p4 = por %p1391_p2, %p1390_p0 }
  0x32   : > { %p1386_p13 = pneg %p1385_p12 }
  0x34   : > { %p1393_p1 = pnand %p1392_p4, %p1386_p13 }
  0x36   : > { %1396 = shalt.err (!%p1393_p1)
}
  0x37   : > { %s1490_s18 = smov [#allocation8]   ;;  %s1397_s26 = scalar_lea.vmem %s209_s12, 16 }
  0x38   : > { %1295 = dma.vmem_to_smem (!%p1572_p7), %s1579_s9, 128, %s1490_s18, [#allocation7]  }
  0x39   : > { %p1398_p5 = scmp.ne.s32.totalorder %s209_s12, %s1397_s26  ;;  %p1405_p8 = scmp.lt.s32.totalorder %s209_s12, %s209_s12 }
  0x3a   : > { %p1406_p10 = scmp.lt.s32.totalorder %s1397_s26, %s1397_s26 }
  0x3b   : > { %p1400_p3 = pnand %p1398_p5, %p1354_p9 }
  0x3c   : > { %p1407_p11 = por %p1406_p10, %p1405_p8 }
  0x3d   : > { %p1401_p6 = pneg %p1400_p3 }
  0x3f   : > { %p1408_p12 = pnand %p1407_p11, %p1401_p6 }
  0x41   : > { %1411 = shalt.err (!%p1408_p12)
}
  0x42   : > { %s1491_s28 = smov [#allocation9]   ;;  %s1616_s29 = sadd.s32 1, %s1486_s21  }
  0x43   : > { %1298 = dma.vmem_to_smem (!%p1572_p7), %s209_s12, 16, %s1491_s28, [#allocation10]  }
  0x44   : > { %2406 = sst [smem:[#allocation17_spill]] %s1616_s29  ;;  %s25_s30 = ssub.s32 %s1486_s21, %s1616_s29 }
  0x45   : > { %p26_p9 = scmp.eq.s32.totalorder %s25_s30, 0  ;;  %s28_s7 = sadd.s32 1, %s1482_s20 }
  0x46   : > { %p35_p13 = scmp.ne.s32.totalorder %s1482_s20, %s1478_s19  ;;  %p36_p0 = scmp.eq.s32.totalorder %s1486_s21, 0 }
  0x47   : > { %s1625_s6 = scalar_select %p26_p9, %s1482_s20, %s28_s7  }
  0x48   : > { %p37_p2 = por %p36_p0, %p35_p13  ;;  %p1307_p4 = scmp.lt.s32.totalorder %s1486_s21, 2 }
  0x49   : > { %2407 = sst [smem:[#allocation18_spill]] %s1625_s6  ;;  %s219_s8 = sand.u32 1, %s1482_s20  }
  0x4a   : > { %s1266_s9 = sshll.u32 %s1486_s21, 10  ;;  %s1171_s10 = sshll.u32 %s219_s8, 6 }
  0x4b   : > { %s2408_s0 = sld [smem:[#allocation19_spill]]  ;;  %s223_s12 = scalar_lea.vmem [#allocation2], %s1171_s10 }
  0x4c   : > { %s230_s15 = sshll.u32 %s223_s12, 4  ;;  %p1635_p7 = pnand %p1307_p4, %p37_p2  ;;  %s1639_s15 = int_to_ptr.vmem [resolvable:$true] %s230_s15 }
  0x4d   : > { %s1641_s17 = scalar_lea.sflag [#allocation3], %s219_s8 }
  0x4e   : > { %p1414_p5 = pneg %p1635_p7 }
  0x51   : > { %s1633_s14 = scalar_lea.hbm %s2408_s0, %s1266_s9  ;;  %s1417_s25 = scalar_lea.hbm %s2408_s0, 2048 }
  0x52   : > { %s1412_s21 = scalar_lea.hbm %s1633_s14, 1024  ;;  %p1418_p8 = scmp.lt.s32.totalorder %s1633_s14, %s2408_s0 }
  0x53   : > { %p1413_p1 = scmp.ne.s32.totalorder %s1633_s14, %s1412_s21  ;;  %p1419_p10 = scmp.lt.s32.totalorder %s1417_s25, %s1412_s21 }
  0x55   : > { %p1415_p3 = pnand %p1414_p5, %p1413_p1  ;;  %p1420_p11 = por %p1419_p10, %p1418_p8 }
  0x57   : > { %p1416_p6 = pneg %p1415_p3 }
  0x59   : > { %p1421_p12 = pnand %p1420_p11, %p1416_p6 }
  0x5b   : > { %1424 = shalt.err (!%p1421_p12)
}
  0x5c   : > { %s1425_s30 = scalar_lea.vmem %s1639_s15, 1024  ;;  %s1492_s7 = smov [#allocation2]  }
  0x5d   : > { %p1426_p9 = scmp.ne.s32.totalorder %s1639_s15, %s1425_s30  ;;  %s1430_s8 = sshll.u32 %s1492_s7, 4  ;;  %s1431_s8 = int_to_ptr.vmem [resolvable:$false] %s1430_s8 }
  0x5e   : > { %s1432_s9 = scalar_lea.vmem %s1431_s8, 2048  ;;  %p1433_p2 = scmp.lt.s32.totalorder %s1639_s15, %s1431_s8 }
  0x5f   : > { %p1428_p13 = pnand %p1426_p9, %p1414_p5  ;;  %p1434_p4 = scmp.lt.s32.totalorder %s1432_s9, %s1425_s30 }
  0x61   : > { %p1429_p0 = pneg %p1428_p13  ;;  %p1435_p1 = por %p1434_p4, %p1433_p2 }
  0x63   : > { %p1436_p3 = pnand %p1435_p1, %p1429_p0 }
  0x65   : > { %1439 = shalt.err (!%p1436_p3)
}
  0x66   : > { %s1493_s10 = smov 128   ;;  %s1494_s11 = smov 8  }
  0x67   : > { %1302 = dma.hbm_to_vmem [thread:$0]  (!%p1635_p7), %s1633_s14, 1024, %s1639_s15, %s1641_s17, %s1493_s10, %s1493_s10, %s1494_s11  }
  0x68   : > { %p2410_p5 = scmp.ne.s32.totalorder %s2401_s27, 0 }
  0x69   : > { %s244_s13 = sand.u32 (!%p2410_p5), 1, %s1478_s19   ;;  %p2411_p6 = scmp.ne.s32.totalorder (!%p2410_p5), %s2399_s23, 0 }
  0x6a   : > { %242 = sbr.rel (%p2410_p5) target bundleno = 361 (0x169), region = 40  ;;  %s1175_s12 = sshll.u32 (!%p2410_p5), %s244_s13, 6 }
  0x6b   : > { %s245_s21 = scalar_lea.sflag (!%p2410_p5), [#allocation3], %s244_s13  ;;  %s1665_s18 = scalar_lea.vmem (!%p2410_p5), [#allocation2], %s1175_s12 }
  0x6f   : > { %1457 = dma.done.wait (%p2411_p6), %s245_s21, 1024  }
  0x70   : > { %1459 = vsyncadd (%p2411_p6), %s245_s21, 4294966272  ;;  %p2412_p8 = scmp.eq.s32.totalorder %s1546_s22, 0 }
  0x72   : > { %1461 = dma.done.wait (%p2412_p8), [#allocation4], 64   ;;  %p2413_p7 = pmov %p2412_p8 }
  0x74   : > { %1463 = vsyncadd (%p2413_p7), [#allocation4], 4294967232  ;;  %p2414_p10 = pmov %p2413_p7 }
  0x75   : > { %p2415_p11 = pmov %p2413_p7 }
  0x76   : > { %1465 = dma.done.wait (%p2414_p10), [#allocation7], 144  }
  0x77   : > { %1467 = vsyncadd (%p2415_p11), [#allocation7], 4294967152  ;;  %p2416_p12 = pmov %p2413_p7 }
  0x78   : > { %p2417_p9 = pmov %p2413_p7 }
  0x79   : > { %1469 = dma.done.wait (%p2416_p12), [#allocation10], 16  }
  0x7a   : > { %1471 = vsyncadd (%p2417_p9), [#allocation10], 4294967280 }
  0x7b   : > { %269 = sfence }
  0x7c   : > { %s1183_s23 = sld [smem:[#allocation5 + $0x2]]  ;;  %v1684_v0 = vld [vmem:[%s1665_s18] sm:$0xff]  ;;  %v1687_v1 = vld [vmem:[%s1665_s18 + $0x8] sm:$0xff]  ;;  %s1495_s17 = smov 126   ;;  %vm341_vm0 = vcmask 1046528   ;;  %v1708_v16 = vld [vmem:[%s1665_s18 + $0x10] sm:$0xff] }
  0x7d   : > { %s1182_s27 = sld [smem:[#allocation5 + $0x1]]  ;;  %s1496_s24 = smov 127   ;;  %v1721_v24 = vld [vmem:[%s1665_s18 + $0x18] sm:$0xff]  ;;  %v1728_v27 = vld [vmem:[%s1665_s18 + $0x20] sm:$0xff]  ;;  %v1738_v32 = vld [vmem:[%s1665_s18 + $0x28] sm:$0xff]  ;;  %vm389_vm1 = vcmask 1045504  }
  0x7e   : > { %s1185_s14 = sld [smem:[#allocation5 + $0x4]]  ;;  %v1747_v35 = vld [vmem:[%s1665_s18 + $0x30] sm:$0xff]  ;;  %v1761_v40 = vld [vmem:[%s1665_s18 + $0x38] sm:$0xff]  ;;  %p292_p13 = scmp.lt.s32.totalorder %s1546_s22, 1  ;;  %vm1040_vm2 = vcmask 111616   ;;  %vm1038_vm3 = vcmask 113664  }
  0x7f   : > { %s1186_s15 = sld [smem:[#allocation5 + $0x5]] }
  0x80   : > { %s1689_s16 = sld [smem:[#allocation5 + $0x81]]  ;;  %s2423_s22 = smov (!%p292_p13, %s1546_s22), 1 }
  0x81   : > { %s1699_s25 = sld [smem:[#allocation5 + $0x82]] }
  0x82   : > { %v322_v2 = vstv %s1183_s23  ;;  %s1206_s26 = sld [smem:[#allocation5 + $0x101]] }
  0x83   : > { %v323_v3 = vmul.f32 %v322_v2, %v1684_v0  ;;  %v308_v4 = vstv %s1182_s27  ;;  %v324_v7 = vmul.f32 %v322_v2, %v1687_v1  ;;  %s1717_s28 = sld [smem:[#allocation5 + $0x102]] }
  0x84   : > { %v309_v5 = vmul.f32 %v308_v4, %v1684_v0  ;;  %v350_v6 = vstv %s1185_s14  ;;  %v310_v10 = vmul.f32 %v308_v4, %v1687_v1  ;;  %s1730_s30 = sld [smem:[#allocation5 + $0x181]] }
  0x85   : > { %327 = vrot.lane.b32.xlu1 %v323_v3, %s1495_s17  ;;  %v351_v8 = vmul.f32 %v350_v6, %v1684_v0  ;;  %v352_v9 = vmul.f32 %v350_v6, %v1687_v1  ;;  %v367_v11 = vstv %s1186_s15  ;;  %s1197_s7 = sld [smem:[#allocation5 + $0x84]] }
  0x86   : > { %313 = vrot.lane.b32.xlu0 %v309_v5, %s1496_s24  ;;  %v368_v14 = vmul.f32 %v367_v11, %v1684_v0  ;;  %v1703_v15 = vmul.f32 %v367_v11, %v1687_v1  ;;  %v443_v17 = vstv %s1689_s16  ;;  %s1742_s8 = sld [smem:[#allocation5 + $0x85]] }
  0x87   : > { %v356_v12 = vrot.slane %v352_v9, 1  ;;  %v355_v13 = vrot.slane %v351_v8, 1  ;;  %v444_v21 = vmul.f32 %v1708_v16, %v443_v17  ;;  %v457_v22 = vstv %s1699_s25  ;;  %s1184_s9 = sld [smem:[#allocation5 + $0x3]] }
  0x88   : > { %v372_v19 = vrot.slane %v368_v14, 1  ;;  %v373_v20 = vrot.slane %v1703_v15, 1  ;;  %v458_v25 = vmul.f32 %v1708_v16, %v457_v22  ;;  %v445_v26 = vmul.f32 %v1721_v24, %v443_v17  ;;  %s1750_s10 = sld [smem:[#allocation5 + $0x182]] }
  0x89   : > { %329 = vrot.lane.b32.xlu1 %v324_v7, %s1495_s17  ;;  %v357_v18 = vsel %vm341_vm0, %v355_v13, %v356_v12  ;;  %v576_v28 = vstv %s1206_s26  ;;  %v459_v30 = vmul.f32 %v1721_v24, %v457_v22  ;;  %v590_v31 = vstv %s1717_s28  ;;  %s1752_s11 = sld [smem:[#allocation5 + $0x104]] }
  0x8a   : > { %315 = vrot.lane.b32.xlu0 %v310_v10, %s1496_s24  ;;  %v374_v23 = vsel %vm341_vm0, %v372_v19, %v373_v20  ;;  %v577_v29 = vmul.f32 %v1728_v27, %v576_v28  ;;  %v591_v33 = vmul.f32 %v1728_v27, %v590_v31  ;;  %v578_v34 = vmul.f32 %v1738_v32, %v576_v28  ;;  %s1758_s13 = sld [smem:[#allocation5 + $0x7]] }
  0x8b   : > { %v709_v36 = vstv %s1730_s30  ;;  %v484_v37 = vstv %s1197_s7  ;;  %v592_v39 = vmul.f32 %v1738_v32, %v590_v31  ;;  %s1765_s12 = sld [smem:[#allocation5 + $0x105]] }
  0x8c   : > { %v710_v38 = vmul.f32 %v1747_v35, %v709_v36  ;;  %v485_v41 = vmul.f32 %v1708_v16, %v484_v37  ;;  %v486_v42 = vmul.f32 %v1721_v24, %v484_v37  ;;  %s1767_s21 = sld [smem:[#allocation5 + $0x83]]  ;;  %v711_v43 = vmul.f32 %v1761_v40, %v709_v36 }
  0x8d   : > { %360 = vrot.lane.b32.xlu1 %v356_v12, %s1496_s24  ;;  %s1770_s23 = sld [smem:[#allocation5 + $0x103]]  ;;  %v501_v44 = vstv %s1742_s8  ;;  %v336_v45 = vstv %s1184_s9 }
  0x8e   : > { %358 = vrot.lane.b32.xlu0 %v357_v18, %s1496_s24  ;;  %s1775_s18 = sld [smem:[#allocation5 + $0x6]]  ;;  %v490_v46 = vrot.slane %v486_v42, 1  ;;  %v489_v47 = vrot.slane %v485_v41, 1  ;;  %v337_v48 = vmul.f32 %v336_v45, %v1684_v0  ;;  %v1779_v49 = vmul.f32 %v336_v45, %v1687_v1 }
  0x8f   : > { %v723_v50 = vstv %s1750_s10  ;;  %v617_v51 = vstv %s1752_s11  ;;  %v502_v52 = vmul.f32 %v1708_v16, %v501_v44  ;;  %v503_v53 = vmul.f32 %v1721_v24, %v501_v44  ;;  %s1787_s27 = sld [smem:[#allocation5 + $0x86]] }
  0x90   : > { %v342_v54 = vrot.slane %v337_v48, 1  ;;  %v343_v55 = vrot.slane %v1779_v49, 1  ;;  %v491_v56 = vsel %vm341_vm0, %v489_v47, %v490_v46  ;;  %v619_v57 = vmul.f32 %v1738_v32, %v617_v51  ;;  %s1805_s14 = sld [smem:[#allocation5 + $0x184]] }
  0x91   : > { %448 = vrot.lane.b32.xlu1 %v444_v21, %s1496_s24  ;;  %v725_v59 = vmul.f32 %v1761_v40, %v723_v50  ;;  %v724_v60 = vmul.f32 %v1747_v35, %v723_v50  ;;  %v398_v61 = vstv %s1758_s13  ;;  %v507_v63 = vrot.slane %v503_v53, 1  ;;  %s1823_s15 = sld [smem:[#allocation5 + $0x106]] }
  0x92   : > { %375 = vrot.lane.b32.xlu0 %v374_v23, %s1495_s17  ;;  %v1795_v58 = vsel %vm341_vm0, %v342_v54, %v343_v55  ;;  %v471_v62 = vstv %s1767_s21  ;;  %v506_v2 = vrot.slane %v502_v52, 1  ;;  %v618_v3 = vmul.f32 %v1728_v27, %v617_v51  ;;  %s1846_s16 = sld [smem:[#allocation5 + $0x8]] }
  0x93   : > { %v634_v4 = vstv %s1765_s12  ;;  %v472_v5 = vmul.f32 %v1708_v16, %v471_v62  ;;  %v1809_v6 = vmul.f32 %v1721_v24, %v471_v62  ;;  %v604_v7 = vstv %s1770_s23  ;;  %s1860_s25 = sld [smem:[#allocation5 + $0x87]] }
  0x94   : > { %v384_v8 = vstv %s1775_s18  ;;  %v623_v9 = vrot.slane %v619_v57, 1  ;;  %v399_v10 = vmul.f32 %v398_v61, %v1684_v0  ;;  %v605_v11 = vmul.f32 %v1728_v27, %v604_v7  ;;  %s1222_s26 = sld [smem:[#allocation5 + $0x185]] }
  0x95   : > { %462 = vrot.lane.b32.xlu1 %v458_v25, %s1495_s17  ;;  %v1816_v12 = vmul.f32 %v1738_v32, %v604_v7  ;;  %v476_v13 = vrot.slane %v472_v5, 1  ;;  %v477_v14 = vrot.slane %v1809_v6, 1  ;;  %v385_v15 = vmul.f32 %v384_v8, %v1684_v0  ;;  %s1201_s28 = sld [smem:[#allocation5 + $0x88]] }
  0x96   : > { %450 = vrot.lane.b32.xlu0 %v445_v26, %s1496_s24  ;;  %v1821_v17 = vmul.f32 %v384_v8, %v1687_v1  ;;  %v622_v18 = vrot.slane %v618_v3, 1  ;;  %v609_v19 = vrot.slane %v605_v11, 1  ;;  %v518_v21 = vstv %s1787_s27  ;;  %s1212_s30 = sld [smem:[#allocation5 + $0x107]] }
  0x97   : > { %v400_v22 = vmul.f32 %v398_v61, %v1687_v1  ;;  %v1833_v23 = vsel %vm341_vm0, %v476_v13, %v477_v14  ;;  %v390_v25 = vrot.slane %v385_v15, 2  ;;  %v508_v28 = vsel %vm341_vm0, %v506_v2, %v507_v63  ;;  %s1213_s7 = sld [smem:[#allocation5 + $0x108]] }
  0x98   : > { %v391_v26 = vrot.slane %v1821_v17, 2  ;;  %v1844_v31 = vmul.f32 %v1721_v24, %v518_v21  ;;  %v635_v36 = vmul.f32 %v1728_v27, %v634_v4  ;;  %v636_v41 = vmul.f32 %v1738_v32, %v634_v4  ;;  %s1224_s8 = sld [smem:[#allocation5 + $0x187]] }
  0x99   : > { %581 = vrot.lane.b32.xlu1 %v577_v29, %s1496_s24  ;;  %v750_v42 = vstv %s1805_s14  ;;  %v404_v44 = vrot.slane %v400_v22, 2  ;;  %v531_v61 = vstv %s1860_s25  ;;  %s1225_s9 = sld [smem:[#allocation5 + $0x188]] }
  0x9a   : > { %464 = vrot.lane.b32.xlu0 %v459_v30, %s1495_s17  ;;  %v519_v30 = vmul.f32 %v1708_v16, %v518_v21  ;;  %v639_v51 = vrot.slane %v635_v36, 1  ;;  %v751_v52 = vmul.f32 %v1747_v35, %v750_v42  ;;  %v640_v54 = vrot.slane %v636_v41, 1  ;;  %s299_s10 = sld [smem:[#allocation5]] }
  0x9b   : > { %v533_v4 = vmul.f32 %v1721_v24, %v531_v61  ;;  %v548_v13 = vstv %s1201_s28  ;;  %s303_s11 = sld [smem:[#allocation6]] }
  0x9c   : > { %v523_v37 = vrot.slane %v519_v30, 2  ;;  %v641_v62 = vsel %vm341_vm0, %v639_v51, %v640_v54  ;;  %v550_v22 = vmul.f32 %v1721_v24, %v548_v13  ;;  %v664_v36 = vstv %s1212_s30  ;;  %s1934_s13 = sld [smem:[#allocation5 + $0x80]] }
  0x9d   : > { %595 = vrot.lane.b32.xlu1 %v591_v33, %s1495_s17  ;;  %v1851_v33 = vsel %vm389_vm1, %v390_v25, %v391_v26  ;;  %v537_v11 = vrot.slane %v533_v4, 2  ;;  %s1947_s12 = sld [smem:[#allocation6 + $0x2]] }
  0x9e   : > { %583 = vrot.lane.b32.xlu0 %v578_v34, %s1496_s24  ;;  %v403_v34 = vrot.slane %v399_v10, 2  ;;  %v767_v10 = vstv %s1222_s26  ;;  %s1971_s21 = sld [smem:[#allocation5 + $0x180]] }
  0x9f   : > { %v769_v21 = vmul.f32 %v1761_v40, %v767_v10  ;;  %s1975_s23 = sld [smem:[#allocation6 + $0x3]] }
  0xa0   : > { %v405_v53 = vsel %vm389_vm1, %v403_v34, %v404_v44  ;;  %v549_v34 = vmul.f32 %v1708_v16, %v548_v13  ;;  %v300_v13 = vstv %s299_s10  ;;  %s1220_s18 = sld [smem:[#allocation5 + $0x183]] }
  0xa1   : > { %714 = vrot.lane.b32.xlu1 %v710_v38, %s1496_s24  ;;  %v524_v38 = vrot.slane %v1844_v31, 2  ;;  %s1979_s27 = sld [smem:[#allocation8]] }
  0xa2   : > { %597 = vrot.lane.b32.xlu0 %v592_v39, %s1495_s17  ;;  %v624_v39 = vsel %vm341_vm0, %v622_v18, %v623_v9  ;;  %s1981_s14 = sld [smem:[#allocation9]] }
  0xa3   : > { %v1866_v45 = vsel %vm389_vm1, %v523_v37, %v524_v38  ;;  %v554_v37 = vrot.slane %v550_v22, 2  ;;  %s1993_s25 = sld [smem:[#allocation8 + $0x100]] }
  0xa4   : > { %s1997_s26 = sld [smem:[#allocation9 + $0x2]] }
  0xa5   : > { %377 = vrot.lane.b32.xlu1 %v373_v20, %s1495_s17  ;;  %v610_v20 = vrot.slane %v1816_v12, 1  ;;  %s1999_s28 = sld [smem:[#allocation8 + $0x180]] }
  0xa6   : > { %716 = vrot.lane.b32.xlu0 %v711_v43, %s1496_s24  ;;  %v651_v43 = vstv %s1823_s15  ;;  %s1985_s15 = sld [smem:[#allocation8 + $0x80]] }
  0xa7   : > { %v1840_v29 = vsel %vm341_vm0, %v609_v19, %v610_v20  ;;  %v1870_v47 = vmul.f32 %v1738_v32, %v651_v43  ;;  %v768_v19 = vmul.f32 %v1747_v35, %v767_v10  ;;  %s2001_s30 = sld [smem:[#allocation9 + $0x3]] }
  0xa8   : > { %s2013_s10 = sld [smem:[#allocation9 + $0x5]] }
  0xa9   : > { %494 = vrot.lane.b32.xlu1 %v490_v46, %s1496_s24  ;;  %v652_v46 = vmul.f32 %v1728_v27, %v651_v43  ;;  %v657_v50 = vrot.slane %v1870_v47, 2  ;;  %v772_v30 = vrot.slane %v768_v19, 1  ;;  %v665_v43 = vmul.f32 %v1728_v27, %v664_v36  ;;  %s2025_s0 = sld [smem:[#allocation8 + $0x380]] }
  0xaa   : > { %492 = vrot.lane.b32.xlu0 %v491_v56, %s1496_s24  ;;  %v752_v56 = vmul.f32 %v1761_v40, %v750_v42  ;;  %v553_v42 = vrot.slane %v549_v34, 2  ;;  %v435_v34 = vstv %s1934_s13  ;;  %s2034_s1 = sld [smem:[#allocation8 + $0x1]] }
  0xab   : > { %v656_v48 = vrot.slane %v652_v46, 2  ;;  %s2041_s2 = sld [smem:[#allocation8 + $0x81]] }
  0xac   : > { %v555_v51 = vsel %vm389_vm1, %v553_v42, %v554_v37  ;;  %s2046_s13 = sld [smem:[#allocation5 + $0x186]] }
  0xad   : > { %730 = vrot.lane.b32.xlu1 %v725_v59, %s1495_s17  ;;  %v1881_v57 = vsel %vm389_vm1, %v656_v48, %v657_v50  ;;  %v415_v59 = vstv %s1846_s16  ;;  %s1987_s16 = sld [smem:[#allocation9 + $0x1]] }
  0xae   : > { %728 = vrot.lane.b32.xlu0 %v724_v60, %s1495_s17  ;;  %v755_v60 = vrot.slane %v751_v52, 1  ;;  %v416_v2 = vmul.f32 %v415_v59, %v1684_v0  ;;  %v417_v3 = vmul.f32 %v415_v59, %v1687_v1  ;;  %s2055_s3 = sld [smem:[#allocation8 + $0x181]] }
  0xaf   : > { %s2057_s4 = sld [smem:[#allocation8 + $0x201]] }
  0xb0   : > { %v421_v7 = vrot.slane %v417_v3, 2  ;;  %v420_v8 = vrot.slane %v416_v2, 2  ;;  %s2082_s6 = sld [smem:[#allocation8 + $0x2]] }
  0xb1   : > { %511 = vrot.lane.b32.xlu1 %v507_v63, %s1495_s17  ;;  %v756_v63 = vrot.slane %v752_v56, 1  ;;  %s2087_s20 = sld [smem:[#allocation8 + $0x82]] }
  0xb2   : > { %509 = vrot.lane.b32.xlu0 %v508_v28, %s1495_s17  ;;  %v422_v15 = vsel %vm389_vm1, %v420_v8, %v421_v7  ;;  %v773_v28 = vrot.slane %v769_v21, 1  ;;  %v302_v21 = vmul.f32 %v300_v13, %v1687_v1  ;;  %s2093_s19 = sld [smem:[#allocation8 + $0x102]] }
  0xb3   : > { %v757_v5 = vsel %vm341_vm0, %v755_v60, %v756_v63  ;;  %s2099_s29 = sld [smem:[#allocation8 + $0x182]] }
  0xb4   : > { %v774_v41 = vsel %vm341_vm0, %v772_v30, %v773_v28 }
  0xb5   : > { %627 = vrot.lane.b32.xlu1 %v623_v9, %s1496_s24  ;;  %v532_v9 = vmul.f32 %v1708_v16, %v531_v61 }
  0xb6   : > { %625 = vrot.lane.b32.xlu0 %v624_v39, %s1496_s24  ;;  %v681_v39 = vstv %s1213_s7  ;;  %s2003_s7 = sld [smem:[#allocation8 + $0x200]] }
  0xb7   : > { %v536_v18 = vrot.slane %v532_v9, 2  ;;  %v682_v46 = vmul.f32 %v1728_v27, %v681_v39  ;;  %v683_v48 = vmul.f32 %v1738_v32, %v681_v39  ;;  %v436_v39 = vmul.f32 %v1708_v16, %v435_v34 }
  0xb9   : > { %408 = vrot.lane.b32.xlu1 %v404_v44, %s1496_s24  ;;  %v538_v25 = vsel %vm389_vm1, %v536_v18, %v537_v11  ;;  %v666_v44 = vmul.f32 %v1738_v32, %v664_v36  ;;  %v687_v60 = vrot.slane %v683_v48, 2  ;;  %v686_v61 = vrot.slane %v682_v46, 2 }
  0xba   : > { %406 = vrot.lane.b32.xlu0 %v405_v53, %s1496_s24  ;;  %v669_v53 = vrot.slane %v665_v43, 2  ;;  %v304_v18 = vstv %s303_s11  ;;  %s2015_s11 = sld [smem:[#allocation8 + $0x300]] }
  0xbb   : > { %v670_v52 = vrot.slane %v666_v44, 2  ;;  %v688_v3 = vsel %vm389_vm1, %v686_v61, %v687_v60  ;;  %v306_v30 = vadd.f32 %v304_v18, %v302_v21 }
  0xbd   : > { %644 = vrot.lane.b32.xlu1 %v640_v54, %s1495_s17  ;;  %v797_v54 = vstv %s1224_s8  ;;  %v671_v59 = vsel %vm389_vm1, %v669_v53, %v670_v52  ;;  %s2007_s8 = sld [smem:[#allocation9 + $0x4]] }
  0xbe   : > { %642 = vrot.lane.b32.xlu0 %v641_v62, %s1495_s17  ;;  %v798_v56 = vmul.f32 %v1747_v35, %v797_v54  ;;  %v799_v62 = vmul.f32 %v1761_v40, %v797_v54 }
  0xc0   : > { %v802_v2 = vrot.slane %v798_v56, 2  ;;  %v803_v4 = vrot.slane %v799_v62, 2  ;;  %v572_v62 = vstv %s1947_s12  ;;  %s2070_s12 = sld [smem:[#allocation8 + $0x301]] }
  0xc1   : > { %760 = vrot.lane.b32.xlu1 %v756_v63, %s1496_s24  ;;  %v814_v63 = vstv %s1225_s9  ;;  %s2011_s9 = sld [smem:[#allocation8 + $0x280]] }
  0xc2   : > { %758 = vrot.lane.b32.xlu0 %v757_v5, %s1496_s24  ;;  %v815_v5 = vmul.f32 %v1747_v35, %v814_v63  ;;  %v804_v8 = vsel %vm389_vm1, %v802_v2, %v803_v4 }
  0xc4   : > { %v819_v10 = vrot.slane %v815_v5, 2 }
  0xc5   : > { %425 = vrot.lane.b32.xlu1 %v421_v7, %s1495_s17  ;;  %v816_v7 = vmul.f32 %v1761_v40, %v814_v63 }
  0xc6   : > { %423 = vrot.lane.b32.xlu0 %v422_v15, %s1495_s17  ;;  %v301_v15 = vmul.f32 %v300_v13, %v1684_v0 }
  0xc7   : > { %v820_v9 = vrot.slane %v816_v7, 2 }
  0xc8   : > { %v305_v19 = vadd.f32 %v304_v18, %v301_v15 }
  0xc9   : > { %541 = vrot.lane.b32.xlu1 %v537_v11, %s1496_s24  ;;  %v821_v11 = vsel %vm389_vm1, %v819_v10, %v820_v9 }
  0xca   : > { %539 = vrot.lane.b32.xlu0 %v538_v25, %s1496_s24 }
  0xcd   : > { %777 = vrot.lane.b32.xlu1 %v773_v28, %s1495_s17 }
  0xce   : > { %775 = vrot.lane.b32.xlu0 %v774_v41, %s1495_s17 }
  0xd1   : > { %558 = vrot.lane.b32.xlu1 %v554_v37, %s1495_s17 }
  0xd2   : > { %556 = vrot.lane.b32.xlu0 %v555_v51, %s1495_s17 }
  0xd5   : > { %674 = vrot.lane.b32.xlu1 %v670_v52, %s1496_s24 }
  0xd6   : > { %672 = vrot.lane.b32.xlu0 %v671_v59, %s1496_s24 }
  0xd9   : > { %691 = vrot.lane.b32.xlu1 %v687_v60, %s1495_s17 }
  0xda   : > { %689 = vrot.lane.b32.xlu0 %v688_v3, %s1495_s17 }
  0xdd   : > { %807 = vrot.lane.b32.xlu1 %v803_v4, %s1496_s24 }
  0xde   : > { %805 = vrot.lane.b32.xlu0 %v804_v8, %s1496_s24  ;;  %s1937_s24 = sld [smem:[#allocation6 + $0x1]] }
  0xe1   : > { %824 = vrot.lane.b32.xlu1 %v820_v9, %s1495_s17 }
  0xe2   : > { %822 = vrot.lane.b32.xlu0 %v821_v11, %s1495_s17  ;;  %s1940_s17 = sld [smem:[#allocation5 + $0x100]] }
  0xe4   : > { %v439_v42 = vstv %s1937_s24  ;;  %s2064_s24 = sld [smem:[#allocation8 + $0x281]] }
  0xe5   : > { %v440_v48 = vadd.f32 %v439_v42, %v436_v39  ;;  %v437_v39 = vmul.f32 %v1721_v24, %v435_v34 }
  0xe8   : > { %v568_v16 = vstv %s1940_s17  ;;  %s2019_s17 = sld [smem:[#allocation9 + $0x6]] }
  0xe9   : > { %v569_v60 = vmul.f32 %v1728_v27, %v568_v16 }
  0xeb   : > { %v573_v49 = vadd.f32 %v572_v62, %v569_v60  ;;  %v861_v60 = vstv %s1987_s16  ;;  %s2231_s16 = sld [smem:[#allocation8 + $0x83]] }
  0xf7   : > { %v328_v22 = vpop.permute.xlu1 %327 }
  0xf8   : > { %v314_v25 = vpop.permute.xlu0 %313 }
  0xf9   : > { %v319_v28 = vadd.f32 %v314_v25, %v305_v19 }
  0xfb   : > { %v333_v36 = vadd.f32 %v328_v22, %v319_v28  ;;  %v330_v37 = vpop.permute.xlu1 %329 }
  0xfc   : > { %v316_v0 = vpop.permute.xlu0 %315 }
  0xfd   : > { %v320_v41 = vadd.f32 %v316_v0, %v306_v30  ;;  %v347_v1 = vadd.f32 %v1795_v58, %v333_v36 }
  0xff   : > { %v334_v43 = vadd.f32 %v330_v37, %v320_v41  ;;  %v361_v44 = vpop.permute.xlu1 %360  ;;  %v701_v37 = vstv %s1971_s21  ;;  %v570_v41 = vmul.f32 %v1738_v32, %v568_v16  ;;  %v705_v32 = vstv %s1975_s23  ;;  %s2049_s21 = sld [smem:[#allocation8 + $0x101]] }
 0x100   : > { %v359_v46 = vpop.permute.xlu0 %358  ;;  %s2076_s23 = sld [smem:[#allocation8 + $0x381]] }
 0x101   : > { %v348_v51 = vadd.f32 %v343_v55, %v334_v43  ;;  %v364_v52 = vadd.f32 %v359_v46, %v347_v1  ;;  %v703_v46 = vmul.f32 %v1761_v40, %v701_v37  ;;  %v574_v34 = vadd.f32 %v572_v62, %v570_v41 }
 0x103   : > { %v365_v53 = vadd.f32 %v361_v44, %v348_v51  ;;  %v449_v54 = vpop.permute.xlu1 %448  ;;  %v702_v44 = vmul.f32 %v1747_v35, %v701_v37  ;;  %v1013_v37 = vstv %s2025_s0  ;;  %s2209_s0 = sld [smem:[#allocation8 + $0x302]] }
 0x104   : > { %v454_v56 = vadd.f32 %v449_v54, %v440_v48  ;;  %v376_v59 = vpop.permute.xlu0 %375  ;;  %v707_v54 = vadd.f32 %v705_v32, %v703_v46 }
 0x105   : > { %v381_v58 = vadd.f32 %v376_v59, %v364_v52  ;;  %v835_v59 = vstv %s1981_s14  ;;  %s2217_s14 = sld [smem:[#allocation8 + $0x382]] }
 0x107   : > { %v463_v61 = vpop.permute.xlu1 %462  ;;  %v1957_v63 = vadd.f32 %v1851_v33, %v381_v58  ;;  %v857_v58 = vstv %s1985_s15  ;;  %s2221_s15 = sld [smem:[#allocation8 + $0x3]] }
 0x108   : > { %v468_v2 = vadd.f32 %v463_v61, %v454_v56  ;;  %v1959_v3 = vpop.permute.xlu0 %450 }
 0x10a   : > { %v481_v55 = vadd.f32 %v1833_v23, %v468_v2  ;;  %v883_v2 = vstv %s1993_s25  ;;  %s2241_s25 = sld [smem:[#allocation8 + $0x103]] }
 0x10b   : > { %v582_v4 = vpop.permute.xlu1 %581 }
 0x10c   : > { %v1964_v5 = vpop.permute.xlu0 %464  ;;  %v587_v7 = vadd.f32 %v582_v4, %v573_v49  ;;  %v887_v49 = vstv %s1997_s26  ;;  %s2243_s26 = sld [smem:[#allocation8 + $0x183]] }
 0x10f   : > { %v596_v8 = vpop.permute.xlu1 %595 }
 0x110   : > { %v601_v9 = vadd.f32 %v596_v8, %v587_v7  ;;  %v1966_v10 = vpop.permute.xlu0 %583  ;;  %v909_v7 = vstv %s1999_s28  ;;  %v913_v8 = vstv %s2001_s30  ;;  %s2245_s28 = sld [smem:[#allocation8 + $0x203]] }
 0x111   : > { %v588_v62 = vadd.f32 %v1966_v10, %v574_v34  ;;  %v891_v34 = vstv %s2049_s21 }
 0x112   : > { %v1969_v27 = vadd.f32 %v1840_v29, %v601_v9  ;;  %v935_v9 = vstv %s2003_s7 }
 0x113   : > { %v1973_v33 = vpop.permute.xlu1 %714 }
 0x114   : > { %v1977_v11 = vpop.permute.xlu0 %597 }
 0x115   : > { %v602_v10 = vadd.f32 %v1977_v11, %v588_v62  ;;  %v943_v62 = vstv %s2057_s4  ;;  %s1267_s4 = sshll.u32 %s2423_s22, 7 }
 0x117   : > { %v378_v23 = vpop.permute.xlu1 %377 }
 0x118   : > { %v382_v13 = vadd.f32 %v378_v23, %v365_v53  ;;  %v1983_v15 = vpop.permute.xlu0 %716  ;;  %v706_v53 = vadd.f32 %v705_v32, %v702_v44  ;;  %v615_v32 = vadd.f32 %v610_v20, %v602_v10  ;;  %v871_v10 = vstv %s2087_s20 }
 0x11a   : > { %v1991_v29 = vadd.f32 %v391_v26, %v382_v13  ;;  %v737_v26 = vstv %s1220_s18  ;;  %s2028_s18 = sld [smem:[#allocation9 + $0x7]]  ;;  %v939_v13 = vstv %s2007_s8 }
 0x11b   : > { %v1995_v18 = vpop.permute.xlu1 %494  ;;  %v738_v30 = vmul.f32 %v1747_v35, %v737_v26  ;;  %v2023_v36 = vmul.f32 %v1761_v40, %v737_v26  ;;  %v961_v26 = vstv %s2011_s9 }
 0x11c   : > { %v493_v19 = vpop.permute.xlu0 %492 }
 0x11d   : > { %v498_v22 = vadd.f32 %v493_v19, %v481_v55  ;;  %v742_v51 = vrot.slane %v738_v30, 1  ;;  %v743_v24 = vrot.slane %v2023_v36, 1  ;;  %v991_v30 = vstv %s2019_s17 }
 0x11f   : > { %v2005_v21 = vpop.permute.xlu1 %730  ;;  %v2062_v56 = vsel %vm341_vm0, %v742_v51, %v743_v24 }
 0x120   : > { %v2009_v17 = vpop.permute.xlu0 %728 }
 0x123   : > { %v2017_v25 = vpop.permute.xlu1 %511 }
 0x124   : > { %v510_v28 = vpop.permute.xlu0 %509 }
 0x125   : > { %v515_v0 = vadd.f32 %v510_v28, %v498_v22  ;;  %v965_v22 = vstv %s2013_s10  ;;  %v987_v28 = vstv %s2015_s11 }
 0x127   : > { %v2036_v1 = vpop.permute.xlu1 %627  ;;  %v2039_v43 = vadd.f32 %v1866_v45, %v515_v0  ;;  %v441_v45 = vadd.f32 %v439_v42, %v437_v39  ;;  %v831_v42 = vstv %s1979_s27  ;;  %v1017_v0 = vstv %s2028_s18  ;;  %s2200_s27 = sld [smem:[#allocation8 + $0x282]] }
 0x128   : > { %v626_v48 = vpop.permute.xlu0 %625  ;;  %v865_v39 = vstv %s2041_s2  ;;  %v632_v6 = vadd.f32 %v2036_v1, %v615_v32  ;;  %s2278_s2 = sld [smem:[#allocation8 + $0x303]] }
 0x129   : > { %v455_v61 = vadd.f32 %v1959_v3, %v441_v45  ;;  %v631_v55 = vadd.f32 %v626_v48, %v1969_v27  ;;  %v784_v27 = vstv %s2046_s13  ;;  %s2105_s13 = sld [smem:[#allocation8 + $0x202]]  ;;  %v721_v48 = vadd.f32 %v1983_v15, %v707_v54 }
 0x12a   : > { %v785_v44 = vmul.f32 %v1747_v35, %v784_v27  ;;  %v2109_v46 = vmul.f32 %v1761_v40, %v784_v27  ;;  %v969_v35 = vstv %s2064_s24 }
 0x12b   : > { %v409_v52 = vpop.permute.xlu1 %408  ;;  %v469_v3 = vadd.f32 %v1964_v5, %v455_v61  ;;  %v839_v5 = vstv %s2034_s1  ;;  %v917_v61 = vstv %s2055_s3  ;;  %v735_v15 = vadd.f32 %v2005_v21, %v721_v48  ;;  %s2275_s1 = sld [smem:[#allocation8 + $0x283]] }
 0x12c   : > { %v407_v16 = vpop.permute.xlu0 %406  ;;  %v413_v12 = vadd.f32 %v409_v52, %v1991_v29  ;;  %v790_v54 = vrot.slane %v2109_v46, 2  ;;  %v1021_v29 = vstv %s2076_s23  ;;  %v845_v52 = vstv %s2082_s6  ;;  %s2288_s3 = sld [smem:[#allocation8 + $0x383]] }
 0x12d   : > { %v482_v51 = vadd.f32 %v477_v14, %v469_v3  ;;  %v412_v21 = vadd.f32 %v407_v16, %v1957_v63  ;;  %v955_v46 = vstv %s2245_s28 }
 0x12f   : > { %v645_v4 = vpop.permute.xlu1 %644  ;;  %v499_v40 = vadd.f32 %v1995_v18, %v482_v51 }
 0x130   : > { %v643_v23 = vpop.permute.xlu0 %642 }
 0x131   : > { %v648_v19 = vadd.f32 %v643_v23, %v631_v55  ;;  %v516_v18 = vadd.f32 %v2017_v25, %v499_v40  ;;  %v649_v55 = vadd.f32 %v645_v4, %v632_v6  ;;  %v748_v23 = vadd.f32 %v743_v24, %v735_v15 }
 0x133   : > { %v761_v11 = vpop.permute.xlu1 %760  ;;  %v2103_v41 = vadd.f32 %v1881_v57, %v648_v19  ;;  %v720_v57 = vadd.f32 %v1973_v33, %v706_v53  ;;  %v995_v33 = vstv %s2070_s12  ;;  %v789_v53 = vrot.slane %v785_v44, 2 }
 0x134   : > { %v759_v45 = vpop.permute.xlu0 %758  ;;  %v923_v19 = vstv %s2099_s29  ;;  %v949_v44 = vstv %s2105_s13  ;;  %v765_v24 = vadd.f32 %v761_v11, %v748_v23  ;;  %v2154_v32 = vadd.f32 %v657_v50, %v649_v55  ;;  %s2320_s29 = scalar_lea.vmem %s2384_s5, %s1267_s4 }
 0x135   : > { %v734_v14 = vadd.f32 %v2009_v17, %v720_v57  ;;  %v897_v17 = vstv %s2093_s19  ;;  %v2146_v36 = vsel %vm389_vm1, %v789_v53, %v790_v54 }
 0x137   : > { %v426_v20 = vpop.permute.xlu1 %425  ;;  %v747_v63 = vadd.f32 %v2062_v56, %v734_v14  ;;  %v529_v56 = vadd.f32 %v524_v38, %v516_v18 }
 0x138   : > { %v430_v3 = vadd.f32 %v426_v20, %v413_v12  ;;  %v424_v1 = vpop.permute.xlu0 %423 }
 0x139   : > { %v429_v25 = vadd.f32 %v424_v1, %v412_v21  ;;  %v764_v57 = vadd.f32 %v759_v45, %v747_v63 }
 0x13a   : > { %v833_v27 = vmul.f32 %v831_v42, %v430_v3  ;;  %v859_v16 = vmul.f32 %v857_v58, %v430_v3  ;;  %v885_v48 = vmul.f32 %v883_v2, %v430_v3  ;;  %v911_v40 = vmul.f32 %v909_v7, %v430_v3 }
 0x13b   : > { %v542_v4 = vpop.permute.xlu1 %541  ;;  %v937_v11 = vmul.f32 %v935_v9, %v430_v3  ;;  %v963_v15 = vmul.f32 %v961_v26, %v430_v3  ;;  %v989_v38 = vmul.f32 %v987_v28, %v430_v3  ;;  %v1015_v47 = vmul.f32 %v1013_v37, %v430_v3 }
 0x13c   : > { %v540_v51 = vpop.permute.xlu0 %539  ;;  %v837_v31 = vadd.f32 %v835_v59, %v833_v27  ;;  %v832_v50 = vmul.f32 %v831_v42, %v429_v25  ;;  %v863_v45 = vadd.f32 %v861_v60, %v859_v16  ;;  %v858_v6 = vmul.f32 %v857_v58, %v429_v25 }
 0x13d   : > { %v884_v12 = vmul.f32 %v883_v2, %v429_v25  ;;  %v910_v14 = vmul.f32 %v909_v7, %v429_v25  ;;  %v889_v53 = vadd.f32 %v887_v49, %v885_v48  ;;  %v936_v18 = vmul.f32 %v935_v9, %v429_v25 }
 0x13e   : > { %v962_v42 = vmul.f32 %v961_v26, %v429_v25  ;;  %v988_v21 = vmul.f32 %v987_v28, %v429_v25  ;;  %v915_v58 = vadd.f32 %v913_v8, %v911_v40  ;;  %v941_v2 = vadd.f32 %v939_v13, %v937_v11 }
 0x13f   : > { %v778_v20 = vpop.permute.xlu1 %777  ;;  %v967_v7 = vadd.f32 %v965_v22, %v963_v15  ;;  %v1014_v3 = vmul.f32 %v1013_v37, %v429_v25  ;;  %v993_v1 = vadd.f32 %v991_v30, %v989_v38  ;;  %v1019_v9 = vadd.f32 %v1017_v0, %v1015_v47 }
 0x140   : > { %v776_v55 = vpop.permute.xlu0 %775  ;;  %v836_v26 = vadd.f32 %v835_v59, %v832_v50  ;;  %v546_v28 = vadd.f32 %v542_v4, %v529_v56  ;;  %v862_v23 = vadd.f32 %v861_v60, %v858_v6  ;;  %v888_v27 = vadd.f32 %v887_v49, %v884_v12 }
 0x141   : > { %v914_v63 = vadd.f32 %v913_v8, %v910_v14  ;;  %v545_v37 = vadd.f32 %v540_v51, %v2039_v43  ;;  %v940_v59 = vadd.f32 %v939_v13, %v936_v18  ;;  %v966_v16 = vadd.f32 %v965_v22, %v962_v42 }
 0x142   : > { %v992_v60 = vadd.f32 %v991_v30, %v988_v21  ;;  %v1018_v43 = vadd.f32 %v1017_v0, %v1014_v3  ;;  %v782_v4 = vadd.f32 %v778_v20, %v765_v24  ;;  %v781_v48 = vadd.f32 %v776_v55, %v764_v57 }
 0x143   : > { %v559_v25 = vpop.permute.xlu1 %558 }
 0x144   : > { %v563_v49 = vadd.f32 %v559_v25, %v546_v28  ;;  %v557_v8 = vpop.permute.xlu0 %556  ;;  %v851_v25 = vstv %s2221_s15 }
 0x145   : > { %v562_v56 = vadd.f32 %v557_v8, %v545_v37  ;;  %v975_v37 = vstv %s2200_s27 }
 0x146   : > { %v841_v13 = vmul.f32 %v839_v5, %v563_v49  ;;  %v867_v22 = vmul.f32 %v865_v39, %v563_v49  ;;  %v893_v51 = vmul.f32 %v891_v34, %v563_v49  ;;  %v919_v30 = vmul.f32 %v917_v61, %v563_v49 }
 0x147   : > { %v945_v40 = vmul.f32 %v943_v62, %v563_v49  ;;  %v971_v11 = vmul.f32 %v969_v35, %v563_v49  ;;  %v997_v0 = vmul.f32 %v995_v33, %v563_v49  ;;  %v1023_v24 = vmul.f32 %v1021_v29, %v563_v49  ;;  %v675_v57 = vpop.permute.xlu1 %674 }
 0x148   : > { %v843_v15 = vadd.f32 %v841_v13, %v837_v31  ;;  %v869_v38 = vadd.f32 %v867_v22, %v863_v45  ;;  %v895_v47 = vadd.f32 %v893_v51, %v889_v53  ;;  %v921_v50 = vadd.f32 %v919_v30, %v915_v58  ;;  %v673_v6 = vpop.permute.xlu0 %672 }
 0x149   : > { %v947_v12 = vadd.f32 %v945_v40, %v941_v2  ;;  %v973_v14 = vadd.f32 %v971_v11, %v967_v7  ;;  %v999_v20 = vadd.f32 %v997_v0, %v993_v1  ;;  %v1025_v18 = vadd.f32 %v1023_v24, %v1019_v9 }
 0x14a   : > { %v840_v42 = vmul.f32 %v839_v5, %v562_v56  ;;  %v866_v21 = vmul.f32 %v865_v39, %v562_v56  ;;  %v892_v31 = vmul.f32 %v891_v34, %v562_v56  ;;  %v918_v45 = vmul.f32 %v917_v61, %v562_v56 }
 0x14b   : > { %v944_v53 = vmul.f32 %v943_v62, %v562_v56  ;;  %v970_v55 = vmul.f32 %v969_v35, %v562_v56  ;;  %v996_v58 = vmul.f32 %v995_v33, %v562_v56  ;;  %v1022_v2 = vmul.f32 %v1021_v29, %v562_v56  ;;  %v692_v7 = vpop.permute.xlu1 %691 }
 0x14c   : > { %v842_v3 = vadd.f32 %v840_v42, %v836_v26  ;;  %v868_v5 = vadd.f32 %v866_v21, %v862_v23  ;;  %v894_v39 = vadd.f32 %v892_v31, %v888_v27  ;;  %v920_v1 = vadd.f32 %v918_v45, %v914_v63  ;;  %v690_v34 = vpop.permute.xlu0 %689 }
 0x14d   : > { %v946_v61 = vadd.f32 %v944_v53, %v940_v59  ;;  %v972_v9 = vadd.f32 %v970_v55, %v966_v16  ;;  %v998_v62 = vadd.f32 %v996_v58, %v992_v60  ;;  %v1024_v28 = vadd.f32 %v1022_v2, %v1018_v43 }
 0x14e   : > { %v679_v35 = vadd.f32 %v675_v57, %v2154_v32  ;;  %v1001_v33 = vstv %s2209_s0  ;;  %v1027_v29 = vstv %s2217_s14  ;;  %v678_v26 = vadd.f32 %v673_v6, %v2103_v41 }
 0x14f   : > { %v808_v23 = vpop.permute.xlu1 %807  ;;  %v795_v27 = vadd.f32 %v790_v54, %v782_v4  ;;  %v794_v63 = vadd.f32 %v2146_v36, %v781_v48  ;;  %v877_v16 = vstv %s2231_s16  ;;  %v903_v60 = vstv %s2241_s25 }
 0x150   : > { %v696_v59 = vadd.f32 %v692_v7, %v679_v35  ;;  %v806_v32 = vpop.permute.xlu0 %805  ;;  %v929_v49 = vstv %s2243_s26  ;;  %v695_v41 = vadd.f32 %v690_v34, %v678_v26  ;;  %v1007_v2 = vstv %s2278_s2 }
 0x151   : > { %v812_v8 = vadd.f32 %v808_v23, %v795_v27  ;;  %v811_v43 = vadd.f32 %v806_v32, %v794_v63  ;;  %v1033_v7 = vstv %s2288_s3 }
 0x152   : > { %v847_v54 = vmul.f32 %v845_v52, %v696_v59  ;;  %v873_v36 = vmul.f32 %v871_v10, %v696_v59  ;;  %v899_v4 = vmul.f32 %v897_v17, %v696_v59  ;;  %v925_v48 = vmul.f32 %v923_v19, %v696_v59 }
 0x153   : > { %v951_v56 = vmul.f32 %v949_v44, %v696_v59  ;;  %v977_v13 = vmul.f32 %v975_v37, %v696_v59  ;;  %v1003_v22 = vmul.f32 %v1001_v33, %v696_v59  ;;  %v1029_v51 = vmul.f32 %v1027_v29, %v696_v59 }
 0x154   : > { %v849_v30 = vadd.f32 %v847_v54, %v843_v15  ;;  %v875_v40 = vadd.f32 %v873_v36, %v869_v38  ;;  %v901_v11 = vadd.f32 %v899_v4, %v895_v47  ;;  %v927_v0 = vadd.f32 %v925_v48, %v921_v50 }
 0x155   : > { %v953_v24 = vadd.f32 %v951_v56, %v947_v12  ;;  %v979_v57 = vadd.f32 %v977_v13, %v973_v14  ;;  %v1005_v6 = vadd.f32 %v1003_v22, %v999_v20  ;;  %v1031_v42 = vadd.f32 %v1029_v51, %v1025_v18  ;;  %v825_v12 = vpop.permute.xlu1 %824 }
 0x156   : > { %v846_v21 = vmul.f32 %v845_v52, %v695_v41  ;;  %v872_v31 = vmul.f32 %v871_v10, %v695_v41  ;;  %v898_v45 = vmul.f32 %v897_v17, %v695_v41  ;;  %v924_v53 = vmul.f32 %v923_v19, %v695_v41  ;;  %v823_v17 = vpop.permute.xlu0 %822 }
 0x157   : > { %v950_v15 = vmul.f32 %v949_v44, %v695_v41  ;;  %v976_v38 = vmul.f32 %v975_v37, %v695_v41  ;;  %v1002_v47 = vmul.f32 %v1001_v33, %v695_v41  ;;  %v1028_v50 = vmul.f32 %v1027_v29, %v695_v41 }
 0x158   : > { %v848_v14 = vadd.f32 %v846_v21, %v842_v3  ;;  %v874_v20 = vadd.f32 %v872_v31, %v868_v5  ;;  %v900_v52 = vadd.f32 %v898_v45, %v894_v39  ;;  %v926_v10 = vadd.f32 %v924_v53, %v920_v1 }
 0x159   : > { %v952_v19 = vadd.f32 %v950_v15, %v946_v61  ;;  %v978_v18 = vadd.f32 %v976_v38, %v972_v9  ;;  %v1004_v55 = vadd.f32 %v1002_v47, %v998_v62  ;;  %v1030_v58 = vadd.f32 %v1028_v50, %v1024_v28 }
 0x15a   : > { %v981_v44 = vstv %s2275_s1  ;;  %v829_v34 = vadd.f32 %v825_v12, %v812_v8  ;;  %v828_v3 = vadd.f32 %v823_v17, %v811_v43 }
 0x15c   : > { %v853_v5 = vmul.f32 %v851_v25, %v829_v34  ;;  %v879_v39 = vmul.f32 %v877_v16, %v829_v34  ;;  %v905_v1 = vmul.f32 %v903_v60, %v829_v34  ;;  %v931_v61 = vmul.f32 %v929_v49, %v829_v34 }
 0x15d   : > { %v957_v9 = vmul.f32 %v955_v46, %v829_v34  ;;  %v983_v62 = vmul.f32 %v981_v44, %v829_v34  ;;  %v1009_v28 = vmul.f32 %v1007_v2, %v829_v34  ;;  %v1035_v35 = vmul.f32 %v1033_v7, %v829_v34 }
 0x15e   : > { %v855_v37 = vadd.f32 %v853_v5, %v849_v30  ;;  %v881_v33 = vadd.f32 %v879_v39, %v875_v40  ;;  %v907_v29 = vadd.f32 %v905_v1, %v901_v11  ;;  %v933_v26 = vadd.f32 %v931_v61, %v927_v0 }
 0x15f   : > { %v959_v23 = vadd.f32 %v957_v9, %v953_v24  ;;  %v985_v27 = vadd.f32 %v983_v62, %v979_v57  ;;  %v1011_v63 = vadd.f32 %v1009_v28, %v1005_v6  ;;  %v1037_v59 = vadd.f32 %v1035_v35, %v1031_v42 }
 0x160   : > { %1041 = vst.msk [vmem:[%s2320_s29 + $0x8] sm:$0x3f] %vm1040_vm2, %v855_v37  ;;  %1043 = vst.msk [vmem:[%s2320_s29 + $0x18] sm:$0x3f] %vm1040_vm2, %v881_v33  ;;  %v852_v32 = vmul.f32 %v851_v25, %v828_v3  ;;  %v878_v41 = vmul.f32 %v877_v16, %v828_v3  ;;  %v904_v8 = vmul.f32 %v903_v60, %v828_v3 }
 0x161   : > { %1045 = vst.msk [vmem:[%s2320_s29 + $0x28] sm:$0x3f] %vm1040_vm2, %v907_v29  ;;  %1047 = vst.msk [vmem:[%s2320_s29 + $0x38] sm:$0x3f] %vm1040_vm2, %v933_v26  ;;  %v930_v43 = vmul.f32 %v929_v49, %v828_v3  ;;  %v956_v25 = vmul.f32 %v955_v46, %v828_v3  ;;  %v982_v16 = vmul.f32 %v981_v44, %v828_v3 }
 0x162   : > { %1049 = vst.msk [vmem:[%s2320_s29 + $0x48] sm:$0x3f] %vm1040_vm2, %v959_v23  ;;  %1051 = vst.msk [vmem:[%s2320_s29 + $0x58] sm:$0x3f] %vm1040_vm2, %v985_v27  ;;  %v1008_v60 = vmul.f32 %v1007_v2, %v828_v3  ;;  %v1034_v49 = vmul.f32 %v1033_v7, %v828_v3  ;;  %v854_v54 = vadd.f32 %v852_v32, %v848_v14 }
 0x163   : > { %1053 = vst.msk [vmem:[%s2320_s29 + $0x68] sm:$0x3f] %vm1040_vm2, %v1011_v63  ;;  %1055 = vst.msk [vmem:[%s2320_s29 + $0x78] sm:$0x3f] %vm1040_vm2, %v1037_v59  ;;  %v880_v36 = vadd.f32 %v878_v41, %v874_v20  ;;  %v906_v4 = vadd.f32 %v904_v8, %v900_v52  ;;  %v932_v48 = vadd.f32 %v930_v43, %v926_v10 }
 0x164   : > { %v958_v56 = vadd.f32 %v956_v25, %v952_v19  ;;  %v984_v13 = vadd.f32 %v982_v16, %v978_v18  ;;  %v1010_v22 = vadd.f32 %v1008_v60, %v1004_v55  ;;  %v1036_v51 = vadd.f32 %v1034_v49, %v1030_v58  ;;  %1039 = vst.msk [vmem:[%s2320_s29] sm:$0xff] %vm1038_vm3, %v854_v54 }
 0x165   : > { %1042 = vst.msk [vmem:[%s2320_s29 + $0x10] sm:$0xff] %vm1038_vm3, %v880_v36  ;;  %1044 = vst.msk [vmem:[%s2320_s29 + $0x20] sm:$0xff] %vm1038_vm3, %v906_v4 }
 0x166   : > { %1046 = vst.msk [vmem:[%s2320_s29 + $0x30] sm:$0xff] %vm1038_vm3, %v932_v48  ;;  %1048 = vst.msk [vmem:[%s2320_s29 + $0x40] sm:$0xff] %vm1038_vm3, %v958_v56 }
 0x167   : > { %1050 = vst.msk [vmem:[%s2320_s29 + $0x50] sm:$0xff] %vm1038_vm3, %v984_v13  ;;  %1052 = vst.msk [vmem:[%s2320_s29 + $0x60] sm:$0xff] %vm1038_vm3, %v1010_v22 }
 0x168   : > { %1054 = vst.msk [vmem:[%s2320_s29 + $0x70] sm:$0xff] %vm1038_vm3, %v1036_v51 }
 0x169 PF: > { %s2418_s21 = sld [smem:[#allocation17_spill]] }
 0x16a   : > { %s2419_s18 = sld [smem:[#allocation15_spill]] }
 0x16b   : > { %s2420_s19 = sld [smem:[#allocation16_spill]] }
 0x16c   : > { %s2421_s20 = sld [smem:[#allocation18_spill]] }
 0x16f   : > { %p18_p0 = scmp.ge.s32.totalorder %s2418_s21, 4  }
 0x171   :  { %20 = sbr.rel (!%p18_p0) target bundleno = 12 (0xc), region = 100 }
 0x176   :  { %1077 = vsyncpa [#allocation3], 1 }
 0x177   :  { %1079 = vsyncpa [#allocation3 + $0x1], 1 }
 0x178   :  { %1080 = vsyncpa [#allocation4], 1 }
 0x179   :  { %1082 = vsyncpa [#allocation4 + $0x1], 1 }
 0x17a   :  { %1083 = vsyncpa [#allocation7], 1 }
 0x17b   :  { %1084 = vsyncpa [#allocation10], 1 }

</bundles_post_ra>
